<compile_context>
chip_gen: v6e
topology: v6e:2x2x1
jax: 0.10.0
libtpu: 0.0.40
codegen_flags: <defaults>
</compile_context>

<pallas_src>
import functools

import jax
import jax.numpy as jnp
from jax.experimental import pallas as pl
from jax.experimental.pallas import tpu as pltpu


# ----------------------------------------------------------------------------
# Fused MaskDecoder kernel (one grid step per batch element)
# ----------------------------------------------------------------------------
def _mask_decoder_kernel(
    tokens_ref, img_ref, dense_ref, pe_ref,
    tr_wt_ref, tr_bt_ref, tr_wsT_ref, tr_bs_ref,
    w1_ref, b1_ref, ln_w_ref, ln_b_ref,
    w2_ref, b2_ref,
    wh0_ref, bh0_ref, wh1_ref, bh1_ref, wh2_ref, bh2_ref, hsel_ref,
    wi0_ref, bi0_ref, wi1_ref, bi1_ref, wi2_ref, bi2_ref,
    masks_ref, iou_ref,
    *, C4, C8, T, eps):
    f32 = jnp.float32
    bf16 = jnp.bfloat16

    def mxu(x, w_ref):
        # bf16 MXU matmul with f32 accumulation (weights stored in bf16).
        return jnp.dot(x.astype(bf16), w_ref[...], preferred_element_type=f32)

    # ------------------------------ token path ------------------------------
    # TODO(synk): the real SAM TwoWayTransformer is an injected dependency (ctor
    # argument), not defined in this module; replaced by a deterministic linear
    # stand-in with identical input/output shapes.
    tok = tokens_ref[0]                                       # (Nt, C) f32
    hs = mxu(tok, tr_wt_ref) + tr_bt_ref[...]                 # (Nt, C)
    iou_tok = hs[0:1, :]                                      # (1, C)
    mask_toks = hs[1:1 + T, :]                                # (T, C)

    # 4 hypernetwork MLPs in 3 matmuls: wide layer 0, block-diagonal layers 1/2.
    h = jnp.maximum(mxu(mask_toks, wh0_ref) + bh0_ref[...], 0.0)   # (T, T*C)
    h = jnp.maximum(mxu(h, wh1_ref) + bh1_ref[...], 0.0)           # (T, T*C)
    h = (mxu(h, wh2_ref) + bh2_ref[...]) * hsel_ref[...]           # (T, T*C8)
    hyper = h[:, 0:C8]
    for t in range(1, T):                 # collapse to the diagonal block (rest is 0)
        hyper = hyper + h[:, t * C8:(t + 1) * C8]                  # (T, C8)

    # IoU prediction head (MLP C -> 256 -> 256 -> T); tiny (1, T) masked store
    # is 16 bytes and irrelevant once everything else is fused.
    v = jnp.maximum(mxu(iou_tok, wi0_ref) + bi0_ref[...], 0.0)
    v = jnp.maximum(mxu(v, wi1_ref) + bi1_ref[...], 0.0)
    iou_ref[0] = (mxu(v, wi2_ref) + bi2_ref[...]).astype(iou_ref.dtype)   # (1, T)

    # ------------------------------ image path ------------------------------
    # channels in sublanes, pixels in lanes: (C, HW)
    x = img_ref[0] + dense_ref[0] + pe_ref[0]                 # src + dense + pos
    src = jnp.dot(tr_wsT_ref[...], x.astype(bf16),
                  preferred_element_type=f32) + tr_bs_ref[...]          # (C, HW)

    # ConvTranspose2d(C -> C4, k=2, s=2): rows ordered (kh1, kw1, c4).
    y1_all = jnp.dot(w1_ref[...], src.astype(bf16),
                     preferred_element_type=f32)                        # (4*C4, HW)
    # Repack the four (kh1, kw1) sub-positions along LANES so every later op
    # runs once, lane-dense: (C4, 4*HW) with cols ordered (kh1, kw1, h, w).
    y1 = jnp.concatenate(
        [y1_all[s1 * C4:(s1 + 1) * C4, :] for s1 in range(4)], axis=1) + b1_ref[...]

    # LayerNorm2d over channels (single sublane reduce) + GELU, in f32.
    mu = jnp.mean(y1, axis=0, keepdims=True)
    var = jnp.mean(jnp.square(y1 - mu), axis=0, keepdims=True)
    y2 = (y1 - mu) * jax.lax.rsqrt(var + eps)
    y2 = y2 * ln_w_ref[...] + ln_b_ref[...]
    # TODO(synk): PyTorch nn.GELU is exact (erf); tanh approximation used.
    y2 = jax.nn.gelu(y2, approximate=True)                    # (C4, 4*HW)

    # ConvTranspose2d(C4 -> C8, k=2, s=2) for all four (kh2, kw2) sub-positions
    # at once as a K=C4 VPU FMA chain (MXU would be <4% utilized at K=8);
    # rows ordered (kh2, kw2, c8); then GELU.
    w2 = w2_ref[...]                                          # (4*C8, C4) f32
    u = w2[:, 0:1] * y2[0:1, :] + b2_ref[...]
    for k in range(1, C4):
        u = u + w2[:, k:k + 1] * y2[k:k + 1, :]               # (4*C8, 4*HW)
    u = jax.nn.gelu(u, approximate=True)

    # Mask product folded into the epilogue: masks = hyper_in @ upscaled,
    # a K=C8 VPU FMA per conv2 sub-position.  'upscaled' never leaves vregs.
    blocks = []
    for s2 in range(4):
        base = s2 * C8
        m = hyper[:, 0:1] * u[base:base + 1, :]
        for c in range(1, C8):
            m = m + hyper[:, c:c + 1] * u[base + c:base + c + 1, :]   # (T, 4*HW)
        blocks.append(m)

    # rows = (kh2, kw2, t), cols = (kh1, kw1, h, w); fully tiled (16, 256).
    masks_ref[0] = jnp.concatenate(blocks, axis=0).astype(masks_ref.dtype)


# ----------------------------------------------------------------------------
# Deterministic parameter construction (shapes follow MaskDecoder.__init__)
# ----------------------------------------------------------------------------
def init_params(key, C=32, num_multimask_outputs=3, iou_hidden=256):
    num_mask_tokens = num_multimask_outputs + 1
    C4, C8 = C // 4, C // 8
    keys = iter(jax.random.split(key, 64))

    def w(shape, scale=0.02):
        return jax.random.normal(next(keys), shape, jnp.float32) * scale

    params = {
        "iou_token": w((1, C)),                     # nn.Embedding(1, C)
        "mask_tokens": w((num_mask_tokens, C)),     # nn.Embedding(num_mask_tokens, C)
        # stand-in transformer weights (see TODO in kernel)
        "tr_wt": w((C, C)), "tr_bt": w((C,)),
        "tr_ws": w((C, C)), "tr_bs": w((C,)),
        # output_upscaling: ConvTranspose2d(C, C//4, 2, 2) -> LN2d -> GELU ->
        #                   ConvTranspose2d(C//4, C//8, 2, 2) -> GELU
        "up1_w": w((C, C4, 2, 2)), "up1_b": w((C4,)),
        "ln_w": jnp.ones((C4,), jnp.float32), "ln_b": jnp.zeros((C4,), jnp.float32),
        "up2_w": w((C4, C8, 2, 2)), "up2_b": w((C8,)),
        # hypernetwork MLPs: MLP(C, C, C//8, 3) x num_mask_tokens
        "hyper_mlps": [
            {"w0": w((C, C)), "b0": w((C,)),
             "w1": w((C, C)), "b1": w((C,)),
             "w2": w((C, C8)), "b2": w((C8,))}
            for _ in range(num_mask_tokens)
        ],
        # iou_prediction_head: MLP(C, 256, num_mask_tokens, 3)
        "iou_mlp": {"w0": w((C, iou_hidden)), "b0": w((iou_hidden,)),
                    "w1": w((iou_hidden, iou_hidden)), "b1": w((iou_hidden,)),
                    "w2": w((iou_hidden, num_mask_tokens)), "b2": w((num_mask_tokens,))},
    }
    return params


def _block_diag(blocks):
    r = sum(b.shape[0] for b in blocks)
    c = sum(b.shape[1] for b in blocks)
    out = jnp.zeros((r, c), blocks[0].dtype)
    i = j = 0
    for b in blocks:
        out = out.at[i:i + b.shape[0], j:j + b.shape[1]].set(b)
        i += b.shape[0]
        j += b.shape[1]
    return out


def pack_params(params):
    """Repack module parameters into kernel-ready layouts (one-time, host side)."""
    C = params["tr_wt"].shape[0]
    C4, C8 = C // 4, C // 8
    T = params["mask_tokens"].shape[0]
    bf16 = jnp.bfloat16
    hm = params["hyper_mlps"]
    im = params["iou_mlp"]
    return {
        "iou_token": params["iou_token"],
        "mask_tokens": params["mask_tokens"],
        # transformer stand-in (MXU weights in bf16, f32 accumulate)
        "tr_wt": params["tr_wt"].astype(bf16),
        "tr_bt": params["tr_bt"].reshape(1, C),
        "tr_wsT": params["tr_ws"].T.astype(bf16),
        "tr_bs": params["tr_bs"].reshape(C, 1),
        # ConvTranspose2d(C, C4, 2, 2): rows ordered (kh, kw, c_out), cols c_in
        "w1": jnp.transpose(params["up1_w"], (2, 3, 1, 0)).reshape(4 * C4, C).astype(bf16),
        "b1": params["up1_b"].reshape(C4, 1),          # same bias for every sub-position
        "ln_w": params["ln_w"].reshape(C4, 1),
        "ln_b": params["ln_b"].reshape(C4, 1),
        # ConvTranspose2d(C4, C8, 2, 2): kept in f32 (used on the VPU)
        "w2": jnp.transpose(params["up2_w"], (2, 3, 1, 0)).reshape(4 * C8, C4),
        "b2": jnp.tile(params["up2_b"], 4).reshape(4 * C8, 1),
        # hypernetwork MLPs: wide layer 0, block-diagonal layers 1 and 2
        "wh0": jnp.concatenate([m["w0"] for m in hm], axis=1).astype(bf16),      # (C, T*C)
        "bh0": jnp.concatenate([m["b0"] for m in hm], axis=0).reshape(1, T * C),
        "wh1": _block_diag([m["w1"] for m in hm]).astype(bf16),                  # (T*C, T*C)
        "bh1": jnp.concatenate([m["b1"] for m in hm], axis=0).reshape(1, T * C),
        "wh2": _block_diag([m["w2"] for m in hm]).astype(bf16),                  # (T*C, T*C8)
        "bh2": jnp.concatenate([m["b2"] for m in hm], axis=0).reshape(1, T * C8),
        "hsel": jnp.repeat(jnp.eye(T, dtype=jnp.float32), C8, axis=1),           # (T, T*C8)
        # IoU head
        "wi0": im["w0"].astype(bf16), "bi0": im["b0"].reshape(1, -1),
        "wi1": im["w1"].astype(bf16), "bi1": im["b1"].reshape(1, -1),
        "wi2": im["w2"].astype(bf16), "bi2": im["b2"].reshape(1, -1),
    }


# ----------------------------------------------------------------------------
# Forward pass: one fused pallas_call + free host-side reshapes
# ----------------------------------------------------------------------------
def mask_decoder_forward(pk, image_embeddings, image_pe,
                         sparse_prompt_embeddings, dense_prompt_embeddings,
                         multimask_output=True):
    B, C, H, W = image_embeddings.shape
    HW = H * W
    T = pk["mask_tokens"].shape[0]
    C4, C8 = C // 4, C // 8

    # ---- token assembly (QAct with quant=False is identity) ----
    output_tokens = jnp.concatenate([pk["iou_token"], pk["mask_tokens"]], axis=0)
    tokens = jnp.concatenate(
        [jnp.broadcast_to(output_tokens[None], (B,) + output_tokens.shape),
         sparse_prompt_embeddings], axis=1)                          # (B, Nt, C)
    Nt = tokens.shape[1]

    # contiguous (free) reshapes: NCHW -> (B, C, H*W)
    img = image_embeddings.reshape(B, C, HW)
    dense = dense_prompt_embeddings.reshape(B, C, HW)
    pe = image_pe.reshape(B, C, HW)

    kernel = functools.partial(_mask_decoder_kernel, C4=C4, C8=C8, T=T, eps=1e-6)

    def per_batch(*tail):
        return pl.BlockSpec((1,) + tail, lambda b: (b, 0, 0))

    def shared(arr):
        return pl.BlockSpec(arr.shape, lambda b: (0,) * arr.ndim)

    weight_names = ["tr_wt", "tr_bt", "tr_wsT", "tr_bs", "w1", "b1", "ln_w", "ln_b",
                    "w2", "b2", "wh0", "bh0", "wh1", "bh1", "wh2", "bh2", "hsel",
                    "wi0", "bi0", "wi1", "bi1", "wi2", "bi2"]
    weights = [pk[n] for n in weight_names]

    masks_raw, iou_raw = pl.pallas_call(
        kernel,
        grid=(B,),
        in_specs=[per_batch(Nt, C), per_batch(C, HW), per_batch(C, HW), per_batch(C, HW)]
                 + [shared(w) for w in weights],
        out_specs=[pl.BlockSpec((1, 4 * T, 4 * HW), lambda b: (b, 0, 0)),
                   pl.BlockSpec((1, 1, T), lambda b: (b, 0, 0))],
        out_shape=[jax.ShapeDtypeStruct((B, 4 * T, 4 * HW), jnp.float32),
                   jax.ShapeDtypeStruct((B, 1, T), jnp.float32)],
        compiler_params=pltpu.CompilerParams(dimension_semantics=("parallel",)),
    )(tokens, img, dense, pe, *weights)

    # Un-shuffle the 2x2 (conv2) x 2x2 (conv1) sub-pixel blocks of the final
    # 32 KiB masks output: rows = (kh2, kw2, t), cols = (kh1, kw1, h, w);
    # output pixel = (4h + 2*kh1 + kh2, 4w + 2*kw1 + kw2).
    masks = masks_raw.reshape(B, 2, 2, T, 2, 2, H, W)
    masks = masks.transpose(0, 3, 6, 4, 1, 7, 5, 2).reshape(B, T, 4 * H, 4 * W)
    iou_pred = iou_raw[:, 0, :]

    if multimask_output:
        return masks[:, 1:], iou_pred[:, 1:]
    return masks[:, :1], iou_pred[:, :1]


mask_decoder_forward_jit = jax.jit(mask_decoder_forward,
                                   static_argnames=("multimask_output",))


# ----------------------------------------------------------------------------
# Pure-JAX reference (simple pixel-major layout) used to validate the kernel
# ----------------------------------------------------------------------------
def reference_forward(params, image_embeddings, image_pe,
                      sparse_prompt_embeddings, dense_prompt_embeddings,
                      multimask_output=True):
    B, C, H, W = image_embeddings.shape
    T = params["mask_tokens"].shape[0]
    C4, C8 = C // 4, C // 8
    hi = jax.lax.Precision.HIGHEST
    bf16 = jnp.bfloat16

    def dot_bf16(a, b):
        return jnp.dot(a.astype(bf16), b.astype(bf16), preferred_element_type=jnp.float32)

    output_tokens = jnp.concatenate([params["iou_token"], params["mask_tokens"]], axis=0)
    tokens = jnp.concatenate(
        [jnp.broadcast_to(output_tokens[None], (B,) + output_tokens.shape),
         sparse_prompt_embeddings], axis=1)
    Nt = tokens.shape[1]
    hs = (dot_bf16(tokens.reshape(B * Nt, C), params["tr_wt"])
          + params["tr_bt"]).reshape(B, Nt, C)

    x = image_embeddings + dense_prompt_embeddings + image_pe
    xp = jnp.transpose(x.reshape(B, C, H * W), (0, 2, 1)).reshape(B * H * W, C)
    src = dot_bf16(xp, params["tr_ws"]) + params["tr_bs"]            # (B*H*W, C)

    y1 = dot_bf16(src, params["up1_w"].reshape(C, C4 * 4)) + jnp.repeat(params["up1_b"], 4)
    y1 = y1.reshape(B, H, W, C4, 2, 2).transpose(0, 1, 4, 2, 5, 3).reshape(B, 2 * H, 2 * W, C4)
    mu = y1.mean(axis=-1, keepdims=True)
    var = jnp.square(y1 - mu).mean(axis=-1, keepdims=True)
    y2 = (y1 - mu) * jax.lax.rsqrt(var + 1e-6) * params["ln_w"] + params["ln_b"]
    y2 = jax.nn.gelu(y2, approximate=True)

    y3 = jnp.dot(y2.reshape(-1, C4), params["up2_w"].reshape(C4, C8 * 4),
                 precision=hi) + jnp.repeat(params["up2_b"], 4)
    y3 = jax.nn.gelu(y3, approximate=True)
    y3 = y3.reshape(B, 2 * H, 2 * W, C8, 2, 2).transpose(0, 1, 4, 2, 5, 3)
    upscaled = y3.reshape(B, 4 * H, 4 * W, C8).transpose(0, 3, 1, 2)  # (B, C8, 4H, 4W)

    iou_tok = hs[:, 0, :]
    mask_toks = hs[:, 1:1 + T, :]
    hyper = []
    for t in range(T):
        p = params["hyper_mlps"][t]
        v = jax.nn.relu(dot_bf16(mask_toks[:, t, :], p["w0"]) + p["b0"])
        v = jax.nn.relu(dot_bf16(v, p["w1"]) + p["b1"])
        hyper.append(dot_bf16(v, p["w2"]) + p["b2"])
    hyper = jnp.stack(hyper, axis=1)                                  # (B, T, C8)
    masks = jnp.einsum("btc,bcp->btp", hyper, upscaled.reshape(B, C8, -1),
                       precision=hi).reshape(B, T, 4 * H, 4 * W)

    p = params["iou_mlp"]
    v = jax.nn.relu(dot_bf16(iou_tok, p["w0"]) + p["b0"])
    v = jax.nn.relu(dot_bf16(v, p["w1"]) + p["b1"])
    iou_pred = dot_bf16(v, p["w2"]) + p["b2"]

    if multimask_output:
        return masks[:, 1:], iou_pred[:, 1:]
    return masks[:, :1], iou_pred[:, :1]


# ----------------------------------------------------------------------------
if __name__ == "__main__":
    key = jax.random.PRNGKey(0)
    k1, k2, k3, k4, kp = jax.random.split(key, 5)

    B, C, H, W = 2, 32, 8, 8          # transformer_dim=32, 8x8 image embedding
    n_sparse = 3
    params = init_params(kp, C=C, num_multimask_outputs=3, iou_hidden=256)
    pk = pack_params(params)

    image_embeddings = jax.random.normal(k1, (B, C, H, W), jnp.float32)
    image_pe = jax.random.normal(k2, (B, C, H, W), jnp.float32)
    sparse_prompt_embeddings = jax.random.normal(k3, (B, n_sparse, C), jnp.float32)
    dense_prompt_embeddings = jax.random.normal(k4, (B, C, H, W), jnp.float32)

    masks, iou_pred = mask_decoder_forward_jit(
        pk, image_embeddings, image_pe,
        sparse_prompt_embeddings, dense_prompt_embeddings,
        multimask_output=True)
    jax.block_until_ready((masks, iou_pred))

    assert masks.shape == (B, 3, 4 * H, 4 * W), masks.shape
    assert iou_pred.shape == (B, 3), iou_pred.shape

    # numerical check against the pure-JAX reference (same math, simple layout)
    masks_ref, iou_ref = reference_forward(
        params, image_embeddings, image_pe,
        sparse_prompt_embeddings, dense_prompt_embeddings, True)
    assert jnp.allclose(masks, masks_ref, atol=5e-4, rtol=5e-2), \
        float(jnp.max(jnp.abs(masks - masks_ref)))
    assert jnp.allclose(iou_pred, iou_ref, atol=5e-4, rtol=5e-2), \
        float(jnp.max(jnp.abs(iou_pred - iou_ref)))

    print("KERNEL_OK")
</pallas_src>

<mosaic_0001>
module attributes {stable_mosaic.version = 11 : i64} {
  func.func @_mask_decoder_kernel(%arg0: i32, %arg1: memref<1x8x32xf32, #tpu.memory_space<vmem>>, %arg2: memref<1x32x64xf32, #tpu.memory_space<vmem>>, %arg3: memref<1x32x64xf32, #tpu.memory_space<vmem>>, %arg4: memref<1x32x64xf32, #tpu.memory_space<vmem>>, %arg5: memref<32x32xbf16, #tpu.memory_space<vmem>>, %arg6: memref<1x32xf32, #tpu.memory_space<vmem>>, %arg7: memref<32x32xbf16, #tpu.memory_space<vmem>>, %arg8: memref<32x1xf32, #tpu.memory_space<vmem>>, %arg9: memref<32x32xbf16, #tpu.memory_space<vmem>>, %arg10: memref<8x1xf32, #tpu.memory_space<vmem>>, %arg11: memref<8x1xf32, #tpu.memory_space<vmem>>, %arg12: memref<8x1xf32, #tpu.memory_space<vmem>>, %arg13: memref<16x8xf32, #tpu.memory_space<vmem>>, %arg14: memref<16x1xf32, #tpu.memory_space<vmem>>, %arg15: memref<32x128xbf16, #tpu.memory_space<vmem>>, %arg16: memref<1x128xf32, #tpu.memory_space<vmem>>, %arg17: memref<128x128xbf16, #tpu.memory_space<vmem>>, %arg18: memref<1x128xf32, #tpu.memory_space<vmem>>, %arg19: memref<128x16xbf16, #tpu.memory_space<vmem>>, %arg20: memref<1x16xf32, #tpu.memory_space<vmem>>, %arg21: memref<4x16xf32, #tpu.memory_space<vmem>>, %arg22: memref<32x256xbf16, #tpu.memory_space<vmem>>, %arg23: memref<1x256xf32, #tpu.memory_space<vmem>>, %arg24: memref<256x256xbf16, #tpu.memory_space<vmem>>, %arg25: memref<1x256xf32, #tpu.memory_space<vmem>>, %arg26: memref<256x4xbf16, #tpu.memory_space<vmem>>, %arg27: memref<1x4xf32, #tpu.memory_space<vmem>>, %arg28: memref<1x16x256xf32, #tpu.memory_space<vmem>>, %arg29: memref<1x1x4xf32, #tpu.memory_space<vmem>>) attributes {dimension_semantics = [#tpu.dimension_semantics<parallel>], iteration_bounds = array<i64: 2>, scalar_prefetch = 0 : i64, scratch_operands = 0 : i64, tpu.core_type = #tpu.core_type<tc>, window_params = [{transform_indices = @transform_0, window_bounds = array<i64: 1, 8, 32>}, {transform_indices = @transform_1, window_bounds = array<i64: 1, 32, 64>}, {transform_indices = @transform_2, window_bounds = array<i64: 1, 32, 64>}, {transform_indices = @transform_3, window_bounds = array<i64: 1, 32, 64>}, {pipeline_mode = #tpu.pipeline_mode<synchronous>, transform_indices = @transform_4, window_bounds = array<i64: 32, 32>}, {pipeline_mode = #tpu.pipeline_mode<synchronous>, transform_indices = @transform_5, window_bounds = array<i64: 1, 32>}, {pipeline_mode = #tpu.pipeline_mode<synchronous>, transform_indices = @transform_6, window_bounds = array<i64: 32, 32>}, {pipeline_mode = #tpu.pipeline_mode<synchronous>, transform_indices = @transform_7, window_bounds = array<i64: 32, 1>}, {pipeline_mode = #tpu.pipeline_mode<synchronous>, transform_indices = @transform_8, window_bounds = array<i64: 32, 32>}, {pipeline_mode = #tpu.pipeline_mode<synchronous>, transform_indices = @transform_9, window_bounds = array<i64: 8, 1>}, {pipeline_mode = #tpu.pipeline_mode<synchronous>, transform_indices = @transform_10, window_bounds = array<i64: 8, 1>}, {pipeline_mode = #tpu.pipeline_mode<synchronous>, transform_indices = @transform_11, window_bounds = array<i64: 8, 1>}, {pipeline_mode = #tpu.pipeline_mode<synchronous>, transform_indices = @transform_12, window_bounds = array<i64: 16, 8>}, {pipeline_mode = #tpu.pipeline_mode<synchronous>, transform_indices = @transform_13, window_bounds = array<i64: 16, 1>}, {pipeline_mode = #tpu.pipeline_mode<synchronous>, transform_indices = @transform_14, window_bounds = array<i64: 32, 128>}, {pipeline_mode = #tpu.pipeline_mode<synchronous>, transform_indices = @transform_15, window_bounds = array<i64: 1, 128>}, {pipeline_mode = #tpu.pipeline_mode<synchronous>, transform_indices = @transform_16, window_bounds = array<i64: 128, 128>}, {pipeline_mode = #tpu.pipeline_mode<synchronous>, transform_indices = @transform_17, window_bounds = array<i64: 1, 128>}, {pipeline_mode = #tpu.pipeline_mode<synchronous>, transform_indices = @transform_18, window_bounds = array<i64: 128, 16>}, {pipeline_mode = #tpu.pipeline_mode<synchronous>, transform_indices = @transform_19, window_bounds = array<i64: 1, 16>}, {pipeline_mode = #tpu.pipeline_mode<synchronous>, transform_indices = @transform_20, window_bounds = array<i64: 4, 16>}, {pipeline_mode = #tpu.pipeline_mode<synchronous>, transform_indices = @transform_21, window_bounds = array<i64: 32, 256>}, {pipeline_mode = #tpu.pipeline_mode<synchronous>, transform_indices = @transform_22, window_bounds = array<i64: 1, 256>}, {pipeline_mode = #tpu.pipeline_mode<synchronous>, transform_indices = @transform_23, window_bounds = array<i64: 256, 256>}, {pipeline_mode = #tpu.pipeline_mode<synchronous>, transform_indices = @transform_24, window_bounds = array<i64: 1, 256>}, {pipeline_mode = #tpu.pipeline_mode<synchronous>, transform_indices = @transform_25, window_bounds = array<i64: 256, 4>}, {pipeline_mode = #tpu.pipeline_mode<synchronous>, transform_indices = @transform_26, window_bounds = array<i64: 1, 4>}, {transform_indices = @transform_27, window_bounds = array<i64: 1, 16, 256>}, {transform_indices = @transform_28, window_bounds = array<i64: 1, 1, 4>}]} {
    %c0 = arith.constant 0 : index
    %c0_0 = arith.constant 0 : index
    %c0_1 = arith.constant 0 : index
    %0 = vector.load %arg1[%c0, %c0_0, %c0_1] : memref<1x8x32xf32, #tpu.memory_space<vmem>>, vector<1x8x32xf32>
    %1 = vector.shape_cast %0 : vector<1x8x32xf32> to vector<8x32xf32>
    %2 = arith.truncf %1 : vector<8x32xf32> to vector<8x32xbf16>
    %c0_2 = arith.constant 0 : index
    %c0_3 = arith.constant 0 : index
    %3 = vector.load %arg5[%c0_2, %c0_3] : memref<32x32xbf16, #tpu.memory_space<vmem>>, vector<32x32xbf16>
    %cst = arith.constant dense<0.000000e+00> : vector<8x32xf32>
    %4 = tpu.matmul %2, %3, %cst {dimension_numbers = #tpu.dot_dimension_numbers<[1], [0], [0], [1], [0, 0, 1, 1], [], []>} : vector<8x32xbf16>, vector<32x32xbf16>, vector<8x32xf32> -> vector<8x32xf32>
    %c0_4 = arith.constant 0 : index
    %c0_5 = arith.constant 0 : index
    %5 = vector.load %arg6[%c0_4, %c0_5] : memref<1x32xf32, #tpu.memory_space<vmem>>, vector<1x32xf32>
    %6 = vector.broadcast %5 : vector<1x32xf32> to vector<8x32xf32>
    %7 = arith.addf %4, %6 : vector<8x32xf32>
    %8 = vector.extract_strided_slice %7 {offsets = [0, 0], sizes = [1, 32], strides = [1, 1]} : vector<8x32xf32> to vector<1x32xf32>
    %9 = vector.extract_strided_slice %7 {offsets = [1, 0], sizes = [4, 32], strides = [1, 1]} : vector<8x32xf32> to vector<4x32xf32>
    %10 = arith.truncf %9 : vector<4x32xf32> to vector<4x32xbf16>
    %c0_6 = arith.constant 0 : index
    %c0_7 = arith.constant 0 : index
    %11 = vector.load %arg15[%c0_6, %c0_7] : memref<32x128xbf16, #tpu.memory_space<vmem>>, vector<32x128xbf16>
    %cst_8 = arith.constant dense<0.000000e+00> : vector<4x128xf32>
    %12 = tpu.matmul %10, %11, %cst_8 {dimension_numbers = #tpu.dot_dimension_numbers<[1], [0], [0], [1], [0, 0, 1, 1], [], []>} : vector<4x32xbf16>, vector<32x128xbf16>, vector<4x128xf32> -> vector<4x128xf32>
    %c0_9 = arith.constant 0 : index
    %c0_10 = arith.constant 0 : index
    %13 = vector.load %arg16[%c0_9, %c0_10] : memref<1x128xf32, #tpu.memory_space<vmem>>, vector<1x128xf32>
    %14 = vector.broadcast %13 : vector<1x128xf32> to vector<4x128xf32>
    %15 = arith.addf %12, %14 : vector<4x128xf32>
    %cst_11 = arith.constant 0.000000e+00 : f32
    %16 = vector.broadcast %cst_11 : f32 to vector<4x128xf32>
    %17 = arith.maximumf %15, %16 : vector<4x128xf32>
    %18 = arith.truncf %17 : vector<4x128xf32> to vector<4x128xbf16>
    %c0_12 = arith.constant 0 : index
    %c0_13 = arith.constant 0 : index
    %19 = vector.load %arg17[%c0_12, %c0_13] : memref<128x128xbf16, #tpu.memory_space<vmem>>, vector<128x128xbf16>
    %cst_14 = arith.constant dense<0.000000e+00> : vector<4x128xf32>
    %20 = tpu.matmul %18, %19, %cst_14 {dimension_numbers = #tpu.dot_dimension_numbers<[1], [0], [0], [1], [0, 0, 1, 1], [], []>} : vector<4x128xbf16>, vector<128x128xbf16>, vector<4x128xf32> -> vector<4x128xf32>
    %c0_15 = arith.constant 0 : index
    %c0_16 = arith.constant 0 : index
    %21 = vector.load %arg18[%c0_15, %c0_16] : memref<1x128xf32, #tpu.memory_space<vmem>>, vector<1x128xf32>
    %22 = vector.broadcast %21 : vector<1x128xf32> to vector<4x128xf32>
    %23 = arith.addf %20, %22 : vector<4x128xf32>
    %cst_17 = arith.constant 0.000000e+00 : f32
    %24 = vector.broadcast %cst_17 : f32 to vector<4x128xf32>
    %25 = arith.maximumf %23, %24 : vector<4x128xf32>
    %26 = arith.truncf %25 : vector<4x128xf32> to vector<4x128xbf16>
    %c0_18 = arith.constant 0 : index
    %c0_19 = arith.constant 0 : index
    %27 = vector.load %arg19[%c0_18, %c0_19] : memref<128x16xbf16, #tpu.memory_space<vmem>>, vector<128x16xbf16>
    %cst_20 = arith.constant dense<0.000000e+00> : vector<4x16xf32>
    %28 = tpu.matmul %26, %27, %cst_20 {dimension_numbers = #tpu.dot_dimension_numbers<[1], [0], [0], [1], [0, 0, 1, 1], [], []>} : vector<4x128xbf16>, vector<128x16xbf16>, vector<4x16xf32> -> vector<4x16xf32>
    %c0_21 = arith.constant 0 : index
    %c0_22 = arith.constant 0 : index
    %29 = vector.load %arg20[%c0_21, %c0_22] : memref<1x16xf32, #tpu.memory_space<vmem>>, vector<1x16xf32>
    %30 = vector.broadcast %29 : vector<1x16xf32> to vector<4x16xf32>
    %31 = arith.addf %28, %30 : vector<4x16xf32>
    %c0_23 = arith.constant 0 : index
    %c0_24 = arith.constant 0 : index
    %32 = vector.load %arg21[%c0_23, %c0_24] : memref<4x16xf32, #tpu.memory_space<vmem>>, vector<4x16xf32>
    %33 = arith.mulf %31, %32 : vector<4x16xf32>
    %34 = vector.extract_strided_slice %33 {offsets = [0, 0], sizes = [4, 4], strides = [1, 1]} : vector<4x16xf32> to vector<4x4xf32>
    %35 = vector.extract_strided_slice %33 {offsets = [0, 4], sizes = [4, 4], strides = [1, 1]} : vector<4x16xf32> to vector<4x4xf32>
    %36 = arith.addf %34, %35 : vector<4x4xf32>
    %37 = vector.extract_strided_slice %33 {offsets = [0, 8], sizes = [4, 4], strides = [1, 1]} : vector<4x16xf32> to vector<4x4xf32>
    %38 = arith.addf %36, %37 : vector<4x4xf32>
    %39 = vector.extract_strided_slice %33 {offsets = [0, 12], sizes = [4, 4], strides = [1, 1]} : vector<4x16xf32> to vector<4x4xf32>
    %40 = arith.addf %38, %39 : vector<4x4xf32>
    %41 = arith.truncf %8 : vector<1x32xf32> to vector<1x32xbf16>
    %c0_25 = arith.constant 0 : index
    %c0_26 = arith.constant 0 : index
    %42 = vector.load %arg22[%c0_25, %c0_26] : memref<32x256xbf16, #tpu.memory_space<vmem>>, vector<32x256xbf16>
    %cst_27 = arith.constant dense<0.000000e+00> : vector<1x256xf32>
    %43 = tpu.matmul %41, %42, %cst_27 {dimension_numbers = #tpu.dot_dimension_numbers<[1], [0], [0], [1], [0, 0, 1, 1], [], []>} : vector<1x32xbf16>, vector<32x256xbf16>, vector<1x256xf32> -> vector<1x256xf32>
    %c0_28 = arith.constant 0 : index
    %c0_29 = arith.constant 0 : index
    %44 = vector.load %arg23[%c0_28, %c0_29] : memref<1x256xf32, #tpu.memory_space<vmem>>, vector<1x256xf32>
    %45 = arith.addf %43, %44 : vector<1x256xf32>
    %cst_30 = arith.constant 0.000000e+00 : f32
    %46 = vector.broadcast %cst_30 : f32 to vector<1x256xf32>
    %47 = arith.maximumf %45, %46 : vector<1x256xf32>
    %48 = arith.truncf %47 : vector<1x256xf32> to vector<1x256xbf16>
    %c0_31 = arith.constant 0 : index
    %c0_32 = arith.constant 0 : index
    %49 = vector.load %arg24[%c0_31, %c0_32] : memref<256x256xbf16, #tpu.memory_space<vmem>>, vector<256x256xbf16>
    %cst_33 = arith.constant dense<0.000000e+00> : vector<1x256xf32>
    %50 = tpu.matmul %48, %49, %cst_33 {dimension_numbers = #tpu.dot_dimension_numbers<[1], [0], [0], [1], [0, 0, 1, 1], [], []>} : vector<1x256xbf16>, vector<256x256xbf16>, vector<1x256xf32> -> vector<1x256xf32>
    %c0_34 = arith.constant 0 : index
    %c0_35 = arith.constant 0 : index
    %51 = vector.load %arg25[%c0_34, %c0_35] : memref<1x256xf32, #tpu.memory_space<vmem>>, vector<1x256xf32>
    %52 = arith.addf %50, %51 : vector<1x256xf32>
    %cst_36 = arith.constant 0.000000e+00 : f32
    %53 = vector.broadcast %cst_36 : f32 to vector<1x256xf32>
    %54 = arith.maximumf %52, %53 : vector<1x256xf32>
    %55 = arith.truncf %54 : vector<1x256xf32> to vector<1x256xbf16>
    %c0_37 = arith.constant 0 : index
    %c0_38 = arith.constant 0 : index
    %56 = vector.load %arg26[%c0_37, %c0_38] : memref<256x4xbf16, #tpu.memory_space<vmem>>, vector<256x4xbf16>
    %cst_39 = arith.constant dense<0.000000e+00> : vector<1x4xf32>
    %57 = tpu.matmul %55, %56, %cst_39 {dimension_numbers = #tpu.dot_dimension_numbers<[1], [0], [0], [1], [0, 0, 1, 1], [], []>} : vector<1x256xbf16>, vector<256x4xbf16>, vector<1x4xf32> -> vector<1x4xf32>
    %c0_40 = arith.constant 0 : index
    %c0_41 = arith.constant 0 : index
    %58 = vector.load %arg27[%c0_40, %c0_41] : memref<1x4xf32, #tpu.memory_space<vmem>>, vector<1x4xf32>
    %59 = arith.addf %57, %58 : vector<1x4xf32>
    %c0_42 = arith.constant 0 : index
    %c0_43 = arith.constant 0 : index
    %c0_44 = arith.constant 0 : index
    %60 = vector.load %arg29[%c0_42, %c0_43, %c0_44] : memref<1x1x4xf32, #tpu.memory_space<vmem>>, vector<1x1x4xf32>
    %61 = vector.shape_cast %60 : vector<1x1x4xf32> to vector<1x4xf32>
    %62 = vector.shape_cast %59 : vector<1x4xf32> to vector<1x1x4xf32>
    tpu.vector_store %arg29[%c0_42, %c0_43, %c0_44], %62 {strides = array<i32>} : memref<1x1x4xf32, #tpu.memory_space<vmem>>, vector<1x1x4xf32>,
    %c0_45 = arith.constant 0 : index
    %c0_46 = arith.constant 0 : index
    %c0_47 = arith.constant 0 : index
    %63 = vector.load %arg2[%c0_45, %c0_46, %c0_47] : memref<1x32x64xf32, #tpu.memory_space<vmem>>, vector<1x32x64xf32>
    %64 = vector.shape_cast %63 : vector<1x32x64xf32> to vector<32x64xf32>
    %c0_48 = arith.constant 0 : index
    %c0_49 = arith.constant 0 : index
    %c0_50 = arith.constant 0 : index
    %65 = vector.load %arg3[%c0_48, %c0_49, %c0_50] : memref<1x32x64xf32, #tpu.memory_space<vmem>>, vector<1x32x64xf32>
    %66 = vector.shape_cast %65 : vector<1x32x64xf32> to vector<32x64xf32>
    %67 = arith.addf %64, %66 : vector<32x64xf32>
    %c0_51 = arith.constant 0 : index
    %c0_52 = arith.constant 0 : index
    %c0_53 = arith.constant 0 : index
    %68 = vector.load %arg4[%c0_51, %c0_52, %c0_53] : memref<1x32x64xf32, #tpu.memory_space<vmem>>, vector<1x32x64xf32>
    %69 = vector.shape_cast %68 : vector<1x32x64xf32> to vector<32x64xf32>
    %70 = arith.addf %67, %69 : vector<32x64xf32>
    %c0_54 = arith.constant 0 : index
    %c0_55 = arith.constant 0 : index
    %71 = vector.load %arg7[%c0_54, %c0_55] : memref<32x32xbf16, #tpu.memory_space<vmem>>, vector<32x32xbf16>
    %72 = arith.truncf %70 : vector<32x64xf32> to vector<32x64xbf16>
    %cst_56 = arith.constant dense<0.000000e+00> : vector<32x64xf32>
    %73 = tpu.matmul %71, %72, %cst_56 {dimension_numbers = #tpu.dot_dimension_numbers<[1], [0], [0], [1], [0, 0, 1, 1], [], []>} : vector<32x32xbf16>, vector<32x64xbf16>, vector<32x64xf32> -> vector<32x64xf32>
    %c0_57 = arith.constant 0 : index
    %c0_58 = arith.constant 0 : index
    %74 = vector.load %arg8[%c0_57, %c0_58] : memref<32x1xf32, #tpu.memory_space<vmem>>, vector<32x1xf32>
    %75 = vector.broadcast %74 : vector<32x1xf32> to vector<32x64xf32>
    %76 = arith.addf %73, %75 : vector<32x64xf32>
    %c0_59 = arith.constant 0 : index
    %c0_60 = arith.constant 0 : index
    %77 = vector.load %arg9[%c0_59, %c0_60] : memref<32x32xbf16, #tpu.memory_space<vmem>>, vector<32x32xbf16>
    %78 = arith.truncf %76 : vector<32x64xf32> to vector<32x64xbf16>
    %cst_61 = arith.constant dense<0.000000e+00> : vector<32x64xf32>
    %79 = tpu.matmul %77, %78, %cst_61 {dimension_numbers = #tpu.dot_dimension_numbers<[1], [0], [0], [1], [0, 0, 1, 1], [], []>} : vector<32x32xbf16>, vector<32x64xbf16>, vector<32x64xf32> -> vector<32x64xf32>
    %80 = vector.extract_strided_slice %79 {offsets = [0, 0], sizes = [8, 64], strides = [1, 1]} : vector<32x64xf32> to vector<8x64xf32>
    %81 = vector.extract_strided_slice %79 {offsets = [8, 0], sizes = [8, 64], strides = [1, 1]} : vector<32x64xf32> to vector<8x64xf32>
    %82 = vector.extract_strided_slice %79 {offsets = [16, 0], sizes = [8, 64], strides = [1, 1]} : vector<32x64xf32> to vector<8x64xf32>
    %83 = vector.extract_strided_slice %79 {offsets = [24, 0], sizes = [8, 64], strides = [1, 1]} : vector<32x64xf32> to vector<8x64xf32>
    %84 = tpu.concatenate %80, %81, %82, %83 in 1 : vector<8x64xf32>, vector<8x64xf32>, vector<8x64xf32>, vector<8x64xf32> -> vector<8x256xf32>
    %c0_62 = arith.constant 0 : index
    %c0_63 = arith.constant 0 : index
    %85 = vector.load %arg10[%c0_62, %c0_63] : memref<8x1xf32, #tpu.memory_space<vmem>>, vector<8x1xf32>
    %86 = vector.broadcast %85 : vector<8x1xf32> to vector<8x256xf32>
    %87 = arith.addf %84, %86 : vector<8x256xf32>
    %cst_64 = arith.constant dense<0.000000e+00> : vector<256xf32>
    %88 = vector.multi_reduction <add>, %87, %cst_64 [0] : vector<8x256xf32> to vector<256xf32>
    %89 = vector.shape_cast %88 : vector<256xf32> to vector<1x256xf32>
    %cst_65 = arith.constant 8.000000e+00 : f32
    %90 = vector.broadcast %cst_65 : f32 to vector<1x256xf32>
    %91 = arith.divf %89, %90 : vector<1x256xf32>
    %92 = vector.broadcast %91 : vector<1x256xf32> to vector<8x256xf32>
    %93 = arith.subf %87, %92 : vector<8x256xf32>
    %94 = arith.mulf %93, %93 : vector<8x256xf32>
    %cst_66 = arith.constant dense<0.000000e+00> : vector<256xf32>
    %95 = vector.multi_reduction <add>, %94, %cst_66 [0] : vector<8x256xf32> to vector<256xf32>
    %96 = vector.shape_cast %95 : vector<256xf32> to vector<1x256xf32>
    %cst_67 = arith.constant 8.000000e+00 : f32
    %97 = vector.broadcast %cst_67 : f32 to vector<1x256xf32>
    %98 = arith.divf %96, %97 : vector<1x256xf32>
    %99 = vector.broadcast %91 : vector<1x256xf32> to vector<8x256xf32>
    %100 = arith.subf %87, %99 : vector<8x256xf32>
    %cst_68 = arith.constant 9.99999997E-7 : f32
    %101 = vector.broadcast %cst_68 : f32 to vector<1x256xf32>
    %102 = arith.addf %98, %101 : vector<1x256xf32>
    %103 = math.rsqrt %102 : vector<1x256xf32>
    %104 = vector.broadcast %103 : vector<1x256xf32> to vector<8x256xf32>
    %105 = arith.mulf %100, %104 : vector<8x256xf32>
    %c0_69 = arith.constant 0 : index
    %c0_70 = arith.constant 0 : index
    %106 = vector.load %arg11[%c0_69, %c0_70] : memref<8x1xf32, #tpu.memory_space<vmem>>, vector<8x1xf32>
    %107 = vector.broadcast %106 : vector<8x1xf32> to vector<8x256xf32>
    %108 = arith.mulf %105, %107 : vector<8x256xf32>
    %c0_71 = arith.constant 0 : index
    %c0_72 = arith.constant 0 : index
    %109 = vector.load %arg12[%c0_71, %c0_72] : memref<8x1xf32, #tpu.memory_space<vmem>>, vector<8x1xf32>
    %110 = vector.broadcast %109 : vector<8x1xf32> to vector<8x256xf32>
    %111 = arith.addf %108, %110 : vector<8x256xf32>
    %112 = arith.mulf %111, %111 : vector<8x256xf32>
    %113 = arith.mulf %111, %112 : vector<8x256xf32>
    %cst_73 = arith.constant 4.471500e-02 : f32
    %114 = vector.broadcast %cst_73 : f32 to vector<8x256xf32>
    %115 = arith.mulf %114, %113 : vector<8x256xf32>
    %116 = arith.addf %111, %115 : vector<8x256xf32>
    %cst_74 = arith.constant 0.797884583 : f32
    %117 = vector.broadcast %cst_74 : f32 to vector<8x256xf32>
    %118 = arith.mulf %117, %116 : vector<8x256xf32>
    %119 = math.tanh %118 : vector<8x256xf32>
    %cst_75 = arith.constant 1.000000e+00 : f32
    %120 = vector.broadcast %cst_75 : f32 to vector<8x256xf32>
    %121 = arith.addf %120, %119 : vector<8x256xf32>
    %cst_76 = arith.constant 5.000000e-01 : f32
    %122 = vector.broadcast %cst_76 : f32 to vector<8x256xf32>
    %123 = arith.mulf %122, %121 : vector<8x256xf32>
    %124 = arith.mulf %111, %123 : vector<8x256xf32>
    %c0_77 = arith.constant 0 : index
    %c0_78 = arith.constant 0 : index
    %125 = vector.load %arg13[%c0_77, %c0_78] : memref<16x8xf32, #tpu.memory_space<vmem>>, vector<16x8xf32>
    %126 = vector.extract_strided_slice %125 {offsets = [0, 0], sizes = [16, 1], strides = [1, 1]} : vector<16x8xf32> to vector<16x1xf32>
    %127 = vector.extract_strided_slice %124 {offsets = [0, 0], sizes = [1, 256], strides = [1, 1]} : vector<8x256xf32> to vector<1x256xf32>
    %128 = vector.broadcast %126 : vector<16x1xf32> to vector<16x256xf32>
    %129 = vector.broadcast %127 : vector<1x256xf32> to vector<16x256xf32>
    %130 = arith.mulf %128, %129 : vector<16x256xf32>
    %c0_79 = arith.constant 0 : index
    %c0_80 = arith.constant 0 : index
    %131 = vector.load %arg14[%c0_79, %c0_80] : memref<16x1xf32, #tpu.memory_space<vmem>>, vector<16x1xf32>
    %132 = vector.broadcast %131 : vector<16x1xf32> to vector<16x256xf32>
    %133 = arith.addf %130, %132 : vector<16x256xf32>
    %134 = vector.extract_strided_slice %125 {offsets = [0, 1], sizes = [16, 1], strides = [1, 1]} : vector<16x8xf32> to vector<16x1xf32>
    %135 = vector.extract_strided_slice %124 {offsets = [1, 0], sizes = [1, 256], strides = [1, 1]} : vector<8x256xf32> to vector<1x256xf32>
    %136 = vector.broadcast %134 : vector<16x1xf32> to vector<16x256xf32>
    %137 = vector.broadcast %135 : vector<1x256xf32> to vector<16x256xf32>
    %138 = arith.mulf %136, %137 : vector<16x256xf32>
    %139 = arith.addf %133, %138 : vector<16x256xf32>
    %140 = vector.extract_strided_slice %125 {offsets = [0, 2], sizes = [16, 1], strides = [1, 1]} : vector<16x8xf32> to vector<16x1xf32>
    %141 = vector.extract_strided_slice %124 {offsets = [2, 0], sizes = [1, 256], strides = [1, 1]} : vector<8x256xf32> to vector<1x256xf32>
    %142 = vector.broadcast %140 : vector<16x1xf32> to vector<16x256xf32>
    %143 = vector.broadcast %141 : vector<1x256xf32> to vector<16x256xf32>
    %144 = arith.mulf %142, %143 : vector<16x256xf32>
    %145 = arith.addf %139, %144 : vector<16x256xf32>
    %146 = vector.extract_strided_slice %125 {offsets = [0, 3], sizes = [16, 1], strides = [1, 1]} : vector<16x8xf32> to vector<16x1xf32>
    %147 = vector.extract_strided_slice %124 {offsets = [3, 0], sizes = [1, 256], strides = [1, 1]} : vector<8x256xf32> to vector<1x256xf32>
    %148 = vector.broadcast %146 : vector<16x1xf32> to vector<16x256xf32>
    %149 = vector.broadcast %147 : vector<1x256xf32> to vector<16x256xf32>
    %150 = arith.mulf %148, %149 : vector<16x256xf32>
    %151 = arith.addf %145, %150 : vector<16x256xf32>
    %152 = vector.extract_strided_slice %125 {offsets = [0, 4], sizes = [16, 1], strides = [1, 1]} : vector<16x8xf32> to vector<16x1xf32>
    %153 = vector.extract_strided_slice %124 {offsets = [4, 0], sizes = [1, 256], strides = [1, 1]} : vector<8x256xf32> to vector<1x256xf32>
    %154 = vector.broadcast %152 : vector<16x1xf32> to vector<16x256xf32>
    %155 = vector.broadcast %153 : vector<1x256xf32> to vector<16x256xf32>
    %156 = arith.mulf %154, %155 : vector<16x256xf32>
    %157 = arith.addf %151, %156 : vector<16x256xf32>
    %158 = vector.extract_strided_slice %125 {offsets = [0, 5], sizes = [16, 1], strides = [1, 1]} : vector<16x8xf32> to vector<16x1xf32>
    %159 = vector.extract_strided_slice %124 {offsets = [5, 0], sizes = [1, 256], strides = [1, 1]} : vector<8x256xf32> to vector<1x256xf32>
    %160 = vector.broadcast %158 : vector<16x1xf32> to vector<16x256xf32>
    %161 = vector.broadcast %159 : vector<1x256xf32> to vector<16x256xf32>
    %162 = arith.mulf %160, %161 : vector<16x256xf32>
    %163 = arith.addf %157, %162 : vector<16x256xf32>
    %164 = vector.extract_strided_slice %125 {offsets = [0, 6], sizes = [16, 1], strides = [1, 1]} : vector<16x8xf32> to vector<16x1xf32>
    %165 = vector.extract_strided_slice %124 {offsets = [6, 0], sizes = [1, 256], strides = [1, 1]} : vector<8x256xf32> to vector<1x256xf32>
    %166 = vector.broadcast %164 : vector<16x1xf32> to vector<16x256xf32>
    %167 = vector.broadcast %165 : vector<1x256xf32> to vector<16x256xf32>
    %168 = arith.mulf %166, %167 : vector<16x256xf32>
    %169 = arith.addf %163, %168 : vector<16x256xf32>
    %170 = vector.extract_strided_slice %125 {offsets = [0, 7], sizes = [16, 1], strides = [1, 1]} : vector<16x8xf32> to vector<16x1xf32>
    %171 = vector.extract_strided_slice %124 {offsets = [7, 0], sizes = [1, 256], strides = [1, 1]} : vector<8x256xf32> to vector<1x256xf32>
    %172 = vector.broadcast %170 : vector<16x1xf32> to vector<16x256xf32>
    %173 = vector.broadcast %171 : vector<1x256xf32> to vector<16x256xf32>
    %174 = arith.mulf %172, %173 : vector<16x256xf32>
    %175 = arith.addf %169, %174 : vector<16x256xf32>
    %176 = arith.mulf %175, %175 : vector<16x256xf32>
    %177 = arith.mulf %175, %176 : vector<16x256xf32>
    %cst_81 = arith.constant 4.471500e-02 : f32
    %178 = vector.broadcast %cst_81 : f32 to vector<16x256xf32>
    %179 = arith.mulf %178, %177 : vector<16x256xf32>
    %180 = arith.addf %175, %179 : vector<16x256xf32>
    %cst_82 = arith.constant 0.797884583 : f32
    %181 = vector.broadcast %cst_82 : f32 to vector<16x256xf32>
    %182 = arith.mulf %181, %180 : vector<16x256xf32>
    %183 = math.tanh %182 : vector<16x256xf32>
    %cst_83 = arith.constant 1.000000e+00 : f32
    %184 = vector.broadcast %cst_83 : f32 to vector<16x256xf32>
    %185 = arith.addf %184, %183 : vector<16x256xf32>
    %cst_84 = arith.constant 5.000000e-01 : f32
    %186 = vector.broadcast %cst_84 : f32 to vector<16x256xf32>
    %187 = arith.mulf %186, %185 : vector<16x256xf32>
    %188 = arith.mulf %175, %187 : vector<16x256xf32>
    %189 = vector.extract_strided_slice %40 {offsets = [0, 0], sizes = [4, 1], strides = [1, 1]} : vector<4x4xf32> to vector<4x1xf32>
    %190 = vector.extract_strided_slice %188 {offsets = [0, 0], sizes = [1, 256], strides = [1, 1]} : vector<16x256xf32> to vector<1x256xf32>
    %191 = vector.broadcast %189 : vector<4x1xf32> to vector<4x256xf32>
    %192 = vector.broadcast %190 : vector<1x256xf32> to vector<4x256xf32>
    %193 = arith.mulf %191, %192 : vector<4x256xf32>
    %194 = vector.extract_strided_slice %40 {offsets = [0, 1], sizes = [4, 1], strides = [1, 1]} : vector<4x4xf32> to vector<4x1xf32>
    %195 = vector.extract_strided_slice %188 {offsets = [1, 0], sizes = [1, 256], strides = [1, 1]} : vector<16x256xf32> to vector<1x256xf32>
    %196 = vector.broadcast %194 : vector<4x1xf32> to vector<4x256xf32>
    %197 = vector.broadcast %195 : vector<1x256xf32> to vector<4x256xf32>
    %198 = arith.mulf %196, %197 : vector<4x256xf32>
    %199 = arith.addf %193, %198 : vector<4x256xf32>
    %200 = vector.extract_strided_slice %40 {offsets = [0, 2], sizes = [4, 1], strides = [1, 1]} : vector<4x4xf32> to vector<4x1xf32>
    %201 = vector.extract_strided_slice %188 {offsets = [2, 0], sizes = [1, 256], strides = [1, 1]} : vector<16x256xf32> to vector<1x256xf32>
    %202 = vector.broadcast %200 : vector<4x1xf32> to vector<4x256xf32>
    %203 = vector.broadcast %201 : vector<1x256xf32> to vector<4x256xf32>
    %204 = arith.mulf %202, %203 : vector<4x256xf32>
    %205 = arith.addf %199, %204 : vector<4x256xf32>
    %206 = vector.extract_strided_slice %40 {offsets = [0, 3], sizes = [4, 1], strides = [1, 1]} : vector<4x4xf32> to vector<4x1xf32>
    %207 = vector.extract_strided_slice %188 {offsets = [3, 0], sizes = [1, 256], strides = [1, 1]} : vector<16x256xf32> to vector<1x256xf32>
    %208 = vector.broadcast %206 : vector<4x1xf32> to vector<4x256xf32>
    %209 = vector.broadcast %207 : vector<1x256xf32> to vector<4x256xf32>
    %210 = arith.mulf %208, %209 : vector<4x256xf32>
    %211 = arith.addf %205, %210 : vector<4x256xf32>
    %212 = vector.extract_strided_slice %40 {offsets = [0, 0], sizes = [4, 1], strides = [1, 1]} : vector<4x4xf32> to vector<4x1xf32>
    %213 = vector.extract_strided_slice %188 {offsets = [4, 0], sizes = [1, 256], strides = [1, 1]} : vector<16x256xf32> to vector<1x256xf32>
    %214 = vector.broadcast %212 : vector<4x1xf32> to vector<4x256xf32>
    %215 = vector.broadcast %213 : vector<1x256xf32> to vector<4x256xf32>
    %216 = arith.mulf %214, %215 : vector<4x256xf32>
    %217 = vector.extract_strided_slice %40 {offsets = [0, 1], sizes = [4, 1], strides = [1, 1]} : vector<4x4xf32> to vector<4x1xf32>
    %218 = vector.extract_strided_slice %188 {offsets = [5, 0], sizes = [1, 256], strides = [1, 1]} : vector<16x256xf32> to vector<1x256xf32>
    %219 = vector.broadcast %217 : vector<4x1xf32> to vector<4x256xf32>
    %220 = vector.broadcast %218 : vector<1x256xf32> to vector<4x256xf32>
    %221 = arith.mulf %219, %220 : vector<4x256xf32>
    %222 = arith.addf %216, %221 : vector<4x256xf32>
    %223 = vector.extract_strided_slice %40 {offsets = [0, 2], sizes = [4, 1], strides = [1, 1]} : vector<4x4xf32> to vector<4x1xf32>
    %224 = vector.extract_strided_slice %188 {offsets = [6, 0], sizes = [1, 256], strides = [1, 1]} : vector<16x256xf32> to vector<1x256xf32>
    %225 = vector.broadcast %223 : vector<4x1xf32> to vector<4x256xf32>
    %226 = vector.broadcast %224 : vector<1x256xf32> to vector<4x256xf32>
    %227 = arith.mulf %225, %226 : vector<4x256xf32>
    %228 = arith.addf %222, %227 : vector<4x256xf32>
    %229 = vector.extract_strided_slice %40 {offsets = [0, 3], sizes = [4, 1], strides = [1, 1]} : vector<4x4xf32> to vector<4x1xf32>
    %230 = vector.extract_strided_slice %188 {offsets = [7, 0], sizes = [1, 256], strides = [1, 1]} : vector<16x256xf32> to vector<1x256xf32>
    %231 = vector.broadcast %229 : vector<4x1xf32> to vector<4x256xf32>
    %232 = vector.broadcast %230 : vector<1x256xf32> to vector<4x256xf32>
    %233 = arith.mulf %231, %232 : vector<4x256xf32>
    %234 = arith.addf %228, %233 : vector<4x256xf32>
    %235 = vector.extract_strided_slice %40 {offsets = [0, 0], sizes = [4, 1], strides = [1, 1]} : vector<4x4xf32> to vector<4x1xf32>
    %236 = vector.extract_strided_slice %188 {offsets = [8, 0], sizes = [1, 256], strides = [1, 1]} : vector<16x256xf32> to vector<1x256xf32>
    %237 = vector.broadcast %235 : vector<4x1xf32> to vector<4x256xf32>
    %238 = vector.broadcast %236 : vector<1x256xf32> to vector<4x256xf32>
    %239 = arith.mulf %237, %238 : vector<4x256xf32>
    %240 = vector.extract_strided_slice %40 {offsets = [0, 1], sizes = [4, 1], strides = [1, 1]} : vector<4x4xf32> to vector<4x1xf32>
    %241 = vector.extract_strided_slice %188 {offsets = [9, 0], sizes = [1, 256], strides = [1, 1]} : vector<16x256xf32> to vector<1x256xf32>
    %242 = vector.broadcast %240 : vector<4x1xf32> to vector<4x256xf32>
    %243 = vector.broadcast %241 : vector<1x256xf32> to vector<4x256xf32>
    %244 = arith.mulf %242, %243 : vector<4x256xf32>
    %245 = arith.addf %239, %244 : vector<4x256xf32>
    %246 = vector.extract_strided_slice %40 {offsets = [0, 2], sizes = [4, 1], strides = [1, 1]} : vector<4x4xf32> to vector<4x1xf32>
    %247 = vector.extract_strided_slice %188 {offsets = [10, 0], sizes = [1, 256], strides = [1, 1]} : vector<16x256xf32> to vector<1x256xf32>
    %248 = vector.broadcast %246 : vector<4x1xf32> to vector<4x256xf32>
    %249 = vector.broadcast %247 : vector<1x256xf32> to vector<4x256xf32>
    %250 = arith.mulf %248, %249 : vector<4x256xf32>
    %251 = arith.addf %245, %250 : vector<4x256xf32>
    %252 = vector.extract_strided_slice %40 {offsets = [0, 3], sizes = [4, 1], strides = [1, 1]} : vector<4x4xf32> to vector<4x1xf32>
    %253 = vector.extract_strided_slice %188 {offsets = [11, 0], sizes = [1, 256], strides = [1, 1]} : vector<16x256xf32> to vector<1x256xf32>
    %254 = vector.broadcast %252 : vector<4x1xf32> to vector<4x256xf32>
    %255 = vector.broadcast %253 : vector<1x256xf32> to vector<4x256xf32>
    %256 = arith.mulf %254, %255 : vector<4x256xf32>
    %257 = arith.addf %251, %256 : vector<4x256xf32>
    %258 = vector.extract_strided_slice %40 {offsets = [0, 0], sizes = [4, 1], strides = [1, 1]} : vector<4x4xf32> to vector<4x1xf32>
    %259 = vector.extract_strided_slice %188 {offsets = [12, 0], sizes = [1, 256], strides = [1, 1]} : vector<16x256xf32> to vector<1x256xf32>
    %260 = vector.broadcast %258 : vector<4x1xf32> to vector<4x256xf32>
    %261 = vector.broadcast %259 : vector<1x256xf32> to vector<4x256xf32>
    %262 = arith.mulf %260, %261 : vector<4x256xf32>
    %263 = vector.extract_strided_slice %40 {offsets = [0, 1], sizes = [4, 1], strides = [1, 1]} : vector<4x4xf32> to vector<4x1xf32>
    %264 = vector.extract_strided_slice %188 {offsets = [13, 0], sizes = [1, 256], strides = [1, 1]} : vector<16x256xf32> to vector<1x256xf32>
    %265 = vector.broadcast %263 : vector<4x1xf32> to vector<4x256xf32>
    %266 = vector.broadcast %264 : vector<1x256xf32> to vector<4x256xf32>
    %267 = arith.mulf %265, %266 : vector<4x256xf32>
    %268 = arith.addf %262, %267 : vector<4x256xf32>
    %269 = vector.extract_strided_slice %40 {offsets = [0, 2], sizes = [4, 1], strides = [1, 1]} : vector<4x4xf32> to vector<4x1xf32>
    %270 = vector.extract_strided_slice %188 {offsets = [14, 0], sizes = [1, 256], strides = [1, 1]} : vector<16x256xf32> to vector<1x256xf32>
    %271 = vector.broadcast %269 : vector<4x1xf32> to vector<4x256xf32>
    %272 = vector.broadcast %270 : vector<1x256xf32> to vector<4x256xf32>
    %273 = arith.mulf %271, %272 : vector<4x256xf32>
    %274 = arith.addf %268, %273 : vector<4x256xf32>
    %275 = vector.extract_strided_slice %40 {offsets = [0, 3], sizes = [4, 1], strides = [1, 1]} : vector<4x4xf32> to vector<4x1xf32>
    %276 = vector.extract_strided_slice %188 {offsets = [15, 0], sizes = [1, 256], strides = [1, 1]} : vector<16x256xf32> to vector<1x256xf32>
    %277 = vector.broadcast %275 : vector<4x1xf32> to vector<4x256xf32>
    %278 = vector.broadcast %276 : vector<1x256xf32> to vector<4x256xf32>
    %279 = arith.mulf %277, %278 : vector<4x256xf32>
    %280 = arith.addf %274, %279 : vector<4x256xf32>
    %281 = tpu.concatenate %211, %234, %257, %280 in 0 : vector<4x256xf32>, vector<4x256xf32>, vector<4x256xf32>, vector<4x256xf32> -> vector<16x256xf32>
    %c0_85 = arith.constant 0 : index
    %c0_86 = arith.constant 0 : index
    %c0_87 = arith.constant 0 : index
    %282 = vector.load %arg28[%c0_85, %c0_86, %c0_87] : memref<1x16x256xf32, #tpu.memory_space<vmem>>, vector<1x16x256xf32>
    %283 = vector.shape_cast %282 : vector<1x16x256xf32> to vector<16x256xf32>
    %284 = vector.shape_cast %281 : vector<16x256xf32> to vector<1x16x256xf32>
    tpu.vector_store %arg28[%c0_85, %c0_86, %c0_87], %284 {strides = array<i32>} : memref<1x16x256xf32, #tpu.memory_space<vmem>>, vector<1x16x256xf32>,
    return
  }
  func.func @transform_0(%arg0: i32) -> (i32, i32, i32) {
    %c0_i32 = arith.constant 0 : i32
    %c0_i32_0 = arith.constant 0 : i32
    %c0_i32_1 = arith.constant 0 : i32
    return %arg0, %c0_i32, %c0_i32_0 : i32, i32, i32
  }
  func.func @transform_1(%arg0: i32) -> (i32, i32, i32) {
    %c0_i32 = arith.constant 0 : i32
    %c0_i32_0 = arith.constant 0 : i32
    %c0_i32_1 = arith.constant 0 : i32
    return %arg0, %c0_i32, %c0_i32_0 : i32, i32, i32
  }
  func.func @transform_2(%arg0: i32) -> (i32, i32, i32) {
    %c0_i32 = arith.constant 0 : i32
    %c0_i32_0 = arith.constant 0 : i32
    %c0_i32_1 = arith.constant 0 : i32
    return %arg0, %c0_i32, %c0_i32_0 : i32, i32, i32
  }
  func.func @transform_3(%arg0: i32) -> (i32, i32, i32) {
    %c0_i32 = arith.constant 0 : i32
    %c0_i32_0 = arith.constant 0 : i32
    %c0_i32_1 = arith.constant 0 : i32
    return %arg0, %c0_i32, %c0_i32_0 : i32, i32, i32
  }
  func.func @transform_4(%arg0: i32) -> (i32, i32) {
    %c0_i32 = arith.constant 0 : i32
    %c0_i32_0 = arith.constant 0 : i32
    %c0_i32_1 = arith.constant 0 : i32
    return %c0_i32, %c0_i32_0 : i32, i32
  }
  func.func @transform_5(%arg0: i32) -> (i32, i32) {
    %c0_i32 = arith.constant 0 : i32
    %c0_i32_0 = arith.constant 0 : i32
    %c0_i32_1 = arith.constant 0 : i32
    return %c0_i32, %c0_i32_0 : i32, i32
  }
  func.func @transform_6(%arg0: i32) -> (i32, i32) {
    %c0_i32 = arith.constant 0 : i32
    %c0_i32_0 = arith.constant 0 : i32
    %c0_i32_1 = arith.constant 0 : i32
    return %c0_i32, %c0_i32_0 : i32, i32
  }
  func.func @transform_7(%arg0: i32) -> (i32, i32) {
    %c0_i32 = arith.constant 0 : i32
    %c0_i32_0 = arith.constant 0 : i32
    %c0_i32_1 = arith.constant 0 : i32
    return %c0_i32, %c0_i32_0 : i32, i32
  }
  func.func @transform_8(%arg0: i32) -> (i32, i32) {
    %c0_i32 = arith.constant 0 : i32
    %c0_i32_0 = arith.constant 0 : i32
    %c0_i32_1 = arith.constant 0 : i32
    return %c0_i32, %c0_i32_0 : i32, i32
  }
  func.func @transform_9(%arg0: i32) -> (i32, i32) {
    %c0_i32 = arith.constant 0 : i32
    %c0_i32_0 = arith.constant 0 : i32
    %c0_i32_1 = arith.constant 0 : i32
    return %c0_i32, %c0_i32_0 : i32, i32
  }
  func.func @transform_10(%arg0: i32) -> (i32, i32) {
    %c0_i32 = arith.constant 0 : i32
    %c0_i32_0 = arith.constant 0 : i32
    %c0_i32_1 = arith.constant 0 : i32
    return %c0_i32, %c0_i32_0 : i32, i32
  }
  func.func @transform_11(%arg0: i32) -> (i32, i32) {
    %c0_i32 = arith.constant 0 : i32
    %c0_i32_0 = arith.constant 0 : i32
    %c0_i32_1 = arith.constant 0 : i32
    return %c0_i32, %c0_i32_0 : i32, i32
  }
  func.func @transform_12(%arg0: i32) -> (i32, i32) {
    %c0_i32 = arith.constant 0 : i32
    %c0_i32_0 = arith.constant 0 : i32
    %c0_i32_1 = arith.constant 0 : i32
    return %c0_i32, %c0_i32_0 : i32, i32
  }
  func.func @transform_13(%arg0: i32) -> (i32, i32) {
    %c0_i32 = arith.constant 0 : i32
    %c0_i32_0 = arith.constant 0 : i32
    %c0_i32_1 = arith.constant 0 : i32
    return %c0_i32, %c0_i32_0 : i32, i32
  }
  func.func @transform_14(%arg0: i32) -> (i32, i32) {
    %c0_i32 = arith.constant 0 : i32
    %c0_i32_0 = arith.constant 0 : i32
    %c0_i32_1 = arith.constant 0 : i32
    return %c0_i32, %c0_i32_0 : i32, i32
  }
  func.func @transform_15(%arg0: i32) -> (i32, i32) {
    %c0_i32 = arith.constant 0 : i32
    %c0_i32_0 = arith.constant 0 : i32
    %c0_i32_1 = arith.constant 0 : i32
    return %c0_i32, %c0_i32_0 : i32, i32
  }
  func.func @transform_16(%arg0: i32) -> (i32, i32) {
    %c0_i32 = arith.constant 0 : i32
    %c0_i32_0 = arith.constant 0 : i32
    %c0_i32_1 = arith.constant 0 : i32
    return %c0_i32, %c0_i32_0 : i32, i32
  }
  func.func @transform_17(%arg0: i32) -> (i32, i32) {
    %c0_i32 = arith.constant 0 : i32
    %c0_i32_0 = arith.constant 0 : i32
    %c0_i32_1 = arith.constant 0 : i32
    return %c0_i32, %c0_i32_0 : i32, i32
  }
  func.func @transform_18(%arg0: i32) -> (i32, i32) {
    %c0_i32 = arith.constant 0 : i32
    %c0_i32_0 = arith.constant 0 : i32
    %c0_i32_1 = arith.constant 0 : i32
    return %c0_i32, %c0_i32_0 : i32, i32
  }
  func.func @transform_19(%arg0: i32) -> (i32, i32) {
    %c0_i32 = arith.constant 0 : i32
    %c0_i32_0 = arith.constant 0 : i32
    %c0_i32_1 = arith.constant 0 : i32
    return %c0_i32, %c0_i32_0 : i32, i32
  }
  func.func @transform_20(%arg0: i32) -> (i32, i32) {
    %c0_i32 = arith.constant 0 : i32
    %c0_i32_0 = arith.constant 0 : i32
    %c0_i32_1 = arith.constant 0 : i32
    return %c0_i32, %c0_i32_0 : i32, i32
  }
  func.func @transform_21(%arg0: i32) -> (i32, i32) {
    %c0_i32 = arith.constant 0 : i32
    %c0_i32_0 = arith.constant 0 : i32
    %c0_i32_1 = arith.constant 0 : i32
    return %c0_i32, %c0_i32_0 : i32, i32
  }
  func.func @transform_22(%arg0: i32) -> (i32, i32) {
    %c0_i32 = arith.constant 0 : i32
    %c0_i32_0 = arith.constant 0 : i32
    %c0_i32_1 = arith.constant 0 : i32
    return %c0_i32, %c0_i32_0 : i32, i32
  }
  func.func @transform_23(%arg0: i32) -> (i32, i32) {
    %c0_i32 = arith.constant 0 : i32
    %c0_i32_0 = arith.constant 0 : i32
    %c0_i32_1 = arith.constant 0 : i32
    return %c0_i32, %c0_i32_0 : i32, i32
  }
  func.func @transform_24(%arg0: i32) -> (i32, i32) {
    %c0_i32 = arith.constant 0 : i32
    %c0_i32_0 = arith.constant 0 : i32
    %c0_i32_1 = arith.constant 0 : i32
    return %c0_i32, %c0_i32_0 : i32, i32
  }
  func.func @transform_25(%arg0: i32) -> (i32, i32) {
    %c0_i32 = arith.constant 0 : i32
    %c0_i32_0 = arith.constant 0 : i32
    %c0_i32_1 = arith.constant 0 : i32
    return %c0_i32, %c0_i32_0 : i32, i32
  }
  func.func @transform_26(%arg0: i32) -> (i32, i32) {
    %c0_i32 = arith.constant 0 : i32
    %c0_i32_0 = arith.constant 0 : i32
    %c0_i32_1 = arith.constant 0 : i32
    return %c0_i32, %c0_i32_0 : i32, i32
  }
  func.func @transform_27(%arg0: i32) -> (i32, i32, i32) {
    %c0_i32 = arith.constant 0 : i32
    %c0_i32_0 = arith.constant 0 : i32
    %c0_i32_1 = arith.constant 0 : i32
    return %arg0, %c0_i32, %c0_i32_0 : i32, i32, i32
  }
  func.func @transform_28(%arg0: i32) -> (i32, i32, i32) {
    %c0_i32 = arith.constant 0 : i32
    %c0_i32_0 = arith.constant 0 : i32
    %c0_i32_1 = arith.constant 0 : i32
    return %arg0, %c0_i32, %c0_i32_0 : i32, i32, i32
  }
}

</mosaic_0001>

<bundles_post_ra>
// kernel: mask_decoder_forward.1
= control target key start
LH: loop header
LB: loop body
LE: loop exit
PB: predicated region body
PF: predicated region fallthrough
CT: control target
= control target key end

     0   :  { %s3753_s0 = inlined_call_operand.vmem [shape: f32[2,8,32], index: 0, kind: input, shape index: {}]   ;;  %s3754_s1 = inlined_call_operand.vmem [shape: f32[2,32,64], index: 1, kind: input, shape index: {}]   ;;  %s3755_s2 = inlined_call_operand.vmem [shape: f32[2,32,64], index: 2, kind: input, shape index: {}]   ;;  %s3756_s3 = inlined_call_operand.vmem [shape: f32[2,32,64], index: 3, kind: input, shape index: {}]   ;;  %s3757_s4 = inlined_call_operand.vmem [shape: bf16[32,32], index: 4, kind: input, shape index: {}]   ;;  %s3758_s5 = inlined_call_operand.vmem [shape: f32[1,32], index: 5, kind: input, shape index: {}]   ;;  %s3759_s6 = inlined_call_operand.vmem [shape: bf16[32,32], index: 6, kind: input, shape index: {}]   ;;  %s3760_s7 = inlined_call_operand.vmem [shape: f32[32,1], index: 7, kind: input, shape index: {}]   ;;  %s3761_s8 = inlined_call_operand.vmem [shape: bf16[32,32], index: 8, kind: input, shape index: {}]   ;;  %s3762_s9 = inlined_call_operand.vmem [shape: f32[8,1], index: 9, kind: input, shape index: {}]   ;;  %s3763_s10 = inlined_call_operand.vmem [shape: f32[8,1], index: 10, kind: input, shape index: {}]   ;;  %s3764_s11 = inlined_call_operand.vmem [shape: f32[8,1], index: 11, kind: input, shape index: {}]   ;;  %s3765_s12 = inlined_call_operand.vmem [shape: f32[16,8], index: 12, kind: input, shape index: {}]   ;;  %s3766_s13 = inlined_call_operand.vmem [shape: f32[16,1], index: 13, kind: input, shape index: {}]   ;;  %s3767_s14 = inlined_call_operand.vmem [shape: bf16[32,128], index: 14, kind: input, shape index: {}]   ;;  %s3768_s15 = inlined_call_operand.vmem [shape: f32[1,128], index: 15, kind: input, shape index: {}]   ;;  %s3769_s16 = inlined_call_operand.vmem [shape: bf16[128,128], index: 16, kind: input, shape index: {}]   ;;  %s3770_s17 = inlined_call_operand.vmem [shape: f32[1,128], index: 17, kind: input, shape index: {}]   ;;  %s3771_s18 = inlined_call_operand.vmem [shape: bf16[128,16], index: 18, kind: input, shape index: {}]   ;;  %s3772_s19 = inlined_call_operand.vmem [shape: f32[1,16], index: 19, kind: input, shape index: {}]   ;;  %s3773_s20 = inlined_call_operand.vmem [shape: f32[4,16], index: 20, kind: input, shape index: {}]   ;;  %s3774_s21 = inlined_call_operand.vmem [shape: bf16[32,256], index: 21, kind: input, shape index: {}]   ;;  %s3775_s22 = inlined_call_operand.vmem [shape: f32[1,256], index: 22, kind: input, shape index: {}]   ;;  %s3776_s23 = inlined_call_operand.vmem [shape: bf16[256,256], index: 23, kind: input, shape index: {}]   ;;  %s3777_s24 = inlined_call_operand.vmem [shape: f32[1,256], index: 24, kind: input, shape index: {}]   ;;  %s3778_s25 = inlined_call_operand.vmem [shape: bf16[256,4], index: 25, kind: input, shape index: {}]   ;;  %s3779_s26 = inlined_call_operand.vmem [shape: f32[1,4], index: 26, kind: input, shape index: {}]   ;;  %s3780_s27 = inlined_call_operand.vmem [shape: f32[2,16,256], index: 27, kind: output, shape index: {0}]   ;;  %s3781_s28 = inlined_call_operand.vmem [shape: f32[2,1,4], index: 28, kind: output, shape index: {1}]  }
   0x1   :  { %3788 = sst [smem:[#allocation2_spill]] %s3753_s0 }
   0x2   :  { %3789 = sst [smem:[#allocation3_spill]] %s3754_s1 }
   0x3   :  { %3790 = sst [smem:[#allocation4_spill]] %s3755_s2 }
   0x4   :  { %3791 = sst [smem:[#allocation5_spill]] %s3756_s3 }
   0x5   :  { %3792 = sst [smem:[#allocation6_spill]] %s3757_s4 }
   0x6   :  { %3793 = sst [smem:[#allocation7_spill]] %s3758_s5 }
   0x7   :  { %3794 = sst [smem:[#allocation8_spill]] %s3759_s6 }
   0x8   :  { %3795 = sst [smem:[#allocation9_spill]] %s3760_s7 }
   0x9   :  { %3796 = sst [smem:[#allocation10_spill]] %s3761_s8  ;;  %s3211_s8 = smov 0  }
   0xa   :  { %3797 = sst [smem:[#allocation11_spill]] %s3762_s9 }
   0xb   :  { %3798 = sst [smem:[#allocation12_spill]] %s3763_s10 }
   0xc   :  { %3799 = sst [smem:[#allocation13_spill]] %s3764_s11 }
   0xd   :  { %3800 = sst [smem:[#allocation14_spill]] %s3765_s12 }
   0xe   :  { %3801 = sst [smem:[#allocation15_spill]] %s3767_s14 }
   0xf   :  { %3802 = sst [smem:[#allocation16_spill]] %s3768_s15 }
  0x10 LB: > { %s2660_s5 = sadd.s32 4294967295, %s3050_s8   ;;  %p2664_p0 = scmp.ge.s32.totalorder %s3050_s8, 1  ;;  %s3050_s8 = sphi %s3211_s8, %s39_s8  }
  0x11   : > { %p794_p1 = scmp.lt.s32.totalorder %s3050_s8, 3 }
  0x13   : > { %p795_p2 = pnand %p2664_p0, %p794_p1 }
  0x14   : > { %s3803_s3 = sld [smem:[#allocation6_spill]] (!%p795_p2)  ;;  %p885_p3 = scmp.lt.s32.totalorder (!%p795_p2), %s2660_s5, 1 }
  0x15   : > { %798 = sbr.rel (%p795_p2) target bundleno = 1599 (0x63f), region = 128  ;;  %s3804_s2 = sld [smem:[#allocation2_spill]] (!%p795_p2) }
  0x16   : > { %s3805_s14 = sld [smem:[#allocation15_spill]] (!%p795_p2) }
  0x17   : > { %s3806_s10 = sld [smem:[#allocation7_spill]] (!%p795_p2) }
  0x18   : > { %s3807_s15 = sld [smem:[#allocation16_spill]] (!%p795_p2) }
  0x19   : > { %s3808_s30 = sld [smem:[#allocation3_spill]] (!%p795_p2) }
  0x1a   : > { %v2934_v0 = vld [vmem:[%s3803_s3 + $0x8] sm:$0xff]   ;;  %v3052_v1 = vmov 0.0   ;;  %v2935_v2 = vld [vmem:[%s3803_s3] sm:$0xff]   ;;  %vm3053_vm0 = vmmov 0   ;;  %s3819_s5 = smov (!%p885_p3, %s2660_s5), 1  ;;  %vm938_vm1 = vcmask 261120   ;;  %v1323_v48 = vlaneseq }
  0x1b   : > { %2821 = vmatprep.subr.bf16.mxu0 %v3052_v1  ;;  %2829 = vmatprep.subr.bf16.mxu1 %v3052_v1  ;;  %s2665_s0 = sshll.u32 %s3819_s5, 3  ;;  %v2938_v7 = vld [vmem:[%s3769_s16 + $0x38] sm:$0xff]   ;;  %v2939_v8 = vld [vmem:[%s3769_s16 + $0x30] sm:$0xff]   ;;  %v2940_v9 = vld [vmem:[%s3769_s16 + $0x28] sm:$0xff]   ;;  %v3054_v27 = vmov 0   ;;  %s3499_s1 = sshll.u32 %s3819_s5, 5 }
  0x1c   : > { %2822 = vmatpush3.bf16.msra.mxu0 %v2934_v0  ;;  %2825 = vmatprep.mubr.msk.bf16.mxu0 %vm3053_vm0, %v3052_v1  ;;  %s888_s7 = scalar_lea.vmem %s3804_s2, %s2665_s0  ;;  %v2936_v5 = vld [vmem:[%s3805_s14 + $0x8] sm:$0xff]   ;;  %v2937_v6 = vld [vmem:[%s3805_s14] sm:$0xff]   ;;  %v2942_v11 = vld [vmem:[%s3769_s16 + $0x18] sm:$0xff]   ;;  %v3343_v52 = vshrl.u32 %v1323_v48, 7  ;;  %s3809_s11 = sld [smem:[#allocation4_spill]]  ;;  %vm1798_vm2 = vcmask 24576  }
  0x1d   : > { %2823 = vmatprep.subr.bf16.mxu0 %v3052_v1  ;;  %2833 = vmatprep.mubr.msk.bf16.mxu1 %vm3053_vm0, %v3052_v1  ;;  %v913_v3 = vld [vmem:[%s888_s7] sm:$0xff]  ;;  %v2943_v12 = vld [vmem:[%s3769_s16 + $0x10] sm:$0xff]   ;;  %v2944_v24 = vld [vmem:[%s3769_s16 + $0x8] sm:$0xff]   ;;  %s3810_s14 = sld [smem:[#allocation5_spill]]  ;;  %s911_s9 = scalar_lea.vmem %s3781_s28, %s3819_s5  ;;  %vm1994_vm3 = vcmask 523264   ;;  %vm2535_vm4 = vcmask 1043456  }
  0x1e   : > { %v914_v4 = vpack.c.bf16 %v913_v3, %v913_v3  ;;  %2830 = vmatpush3.bf16.msra.mxu1 %v2936_v5  ;;  %v2941_v10 = vld [vmem:[%s3769_s16 + $0x20] sm:$0xff]   ;;  %v2948_v26 = vld [vmem:[%s3774_s21 + $0x14] ss:$8 sps:$4 sm:$0xff]   ;;  %2915 = vset.pattern.permute.xlu0 %v3054_v27  ;;  %v2954_v30 = vld [vmem:[%s3771_s18 + $0x28] sm:$0xff]   ;;  %v3346_v55 = vsub.s32 1, %v3343_v52  ;;  %s3812_s12 = sld [smem:[#allocation11_spill]] }
  0x1f   : > { %2831 = vmatprep.subr.bf16.mxu1 %v3052_v1  ;;  %v2674_v13 = vld [vmem:[%s3806_s10] ss:$0 sm:$0xff]  ;;  %2916 = vset.pattern.permute.xlu1 %v3054_v27  ;;  %v2952_v28 = vld [vmem:[%s3771_s18 + $0x38] sm:$0xff]   ;;  %v2953_v29 = vld [vmem:[%s3771_s18 + $0x30] sm:$0xff]   ;;  %s893_s6 = scalar_lea.vmem %s3808_s30, %s3499_s1  ;;  %s3811_s10 = sld [smem:[#allocation9_spill]] }
  0x20   : > { %2824 = vmatpush3.bf16.msra.mxu0 %v2935_v2  ;;  %v2945_v25 = vld [vmem:[%s3769_s16] sm:$0xff]   ;;  %v2956_v32 = vld [vmem:[%s3771_s18 + $0x18] sm:$0xff]   ;;  %v2957_v33 = vld [vmem:[%s3771_s18 + $0x10] sm:$0xff]   ;;  %s3813_s0 = sld [smem:[#allocation8_spill]]  ;;  %s3058_s7 = smov 116  }
  0x21   : > { %2837 = vmatprep.subr.bf16.mxu0 %v3052_v1  ;;  %v2955_v31 = vld [vmem:[%s3771_s18 + $0x20] sm:$0xff]   ;;  %v2958_v34 = vld [vmem:[%s3771_s18 + $0x8] sm:$0xff]   ;;  %v2946_v41 = vld [vmem:[%s3774_s21 + $0x10] ss:$8 sps:$4 sm:$0xff]   ;;  %s3815_s2 = sld [smem:[#allocation13_spill]] }
  0x22   : > { %2832 = vmatpush3.bf16.msra.mxu1 %v2937_v6  ;;  %v2678_v35 = vld [vmem:[%s3807_s15] ss:$0 sm:$0xff]  ;;  %v2951_v43 = vld [vmem:[%s3774_s21 + $0x4] ss:$8 sps:$4 sm:$0xff]   ;;  %v2962_v47 = vld [vmem:[%s3776_s23 + $0x74] ss:$8 sps:$4 sm:$0xff]   ;;  %s898_s3 = scalar_lea.vmem %s3809_s11, %s3499_s1  ;;  %s908_s11 = scalar_lea.vmem %s3780_s27, %s3499_s1 }
  0x23   : > { %2826 = vmatmul.mubr.msk.bf16.vlgmr.msra.gmra.mxu0 %vm938_vm1, %v914_v4  ;;  %2857 = vmatprep.subr.bf16.mxu1 %v3052_v1  ;;  %v2949_v45 = vld [vmem:[%s3774_s21] ss:$8 sps:$4 sm:$0xff]   ;;  %v2960_v57 = vld [vmem:[%s3776_s23 + $0x70] ss:$8 sps:$4 sm:$0xff]   ;;  %v2965_v59 = vld [vmem:[%s3776_s23 + $0x64] ss:$8 sps:$4 sm:$0xff]   ;;  %s903_s15 = scalar_lea.vmem %s3810_s14, %s3499_s1 }
  0x24   : > { %2853 = vmatprep.mubr.msk.bf16.mxu0 %vm3053_vm0, %v3052_v1  ;;  %2838 = vmatpush3.bf16.msra.mxu0 %v2938_v7  ;;  %v2959_v46 = vld [vmem:[%s3771_s18] sm:$0xff]   ;;  %v2966_v5 = vld [vmem:[%s3776_s23 + $0x50] ss:$8 sps:$4 sm:$0xff]   ;;  %s3816_s5 = sld [smem:[#allocation12_spill]]  ;;  %s3056_s14 = smov 120  }
  0x25   : > { %2839 = vmatprep.subr.bf16.mxu0 %v3052_v1  ;;  %v2682_v49 = vld [vmem:[%s3770_s17] ss:$0 sm:$0xff]  ;;  %v2971_v7 = vld [vmem:[%s3776_s23 + $0x44] ss:$8 sps:$4 sm:$0xff]  }
  0x26   : > { %v3357_v61 = vld [vmem:[%s3775_s22] sm:$0x3] }
  0x27   : > { %v1330_v62 = vrot.slane %v3357_v61, %v3346_v55  ;;  %v2963_v0 = vld [vmem:[%s3776_s23 + $0x60] ss:$8 sps:$4 sm:$0xff]  }
  0x28   : > { %2840 = vmatpush3.bf16.msra.mxu0 %v2939_v8  ;;  %v3015_v48 = vld [vmem:[%s3778_s25 + $0x20] sm:$0xff]  }
  0x29   : > { %2841 = vmatprep.subr.bf16.mxu0 %v3052_v1 }
  0x2c   : > { %2842 = vmatpush3.bf16.msra.mxu0 %v2940_v9 }
  0x2d   : > { %2843 = vmatprep.subr.bf16.mxu0 %v3052_v1 }
  0x30   : > { %2844 = vmatpush3.bf16.msra.mxu0 %v2941_v10  ;;  %v2969_v10 = vld [vmem:[%s3776_s23 + $0x40] ss:$8 sps:$4 sm:$0xff]  }
  0x31   : > { %2845 = vmatprep.subr.bf16.mxu0 %v3052_v1 }
  0x34   : > { %2846 = vmatpush3.bf16.msra.mxu0 %v2942_v11  ;;  %v2974_v11 = vld [vmem:[%s3776_s23 + $0x34] ss:$8 sps:$4 sm:$0xff]  }
  0x35   : > { %2847 = vmatprep.subr.bf16.mxu0 %v3052_v1 }
  0x38   : > { %2848 = vmatpush3.bf16.msra.mxu0 %v2943_v12  ;;  %v2972_v12 = vld [vmem:[%s3776_s23 + $0x30] ss:$8 sps:$4 sm:$0xff]  }
  0x39   : > { %2849 = vmatprep.subr.bf16.mxu0 %v3052_v1 }
  0x3c   : > { %2850 = vmatpush3.bf16.msra.mxu0 %v2944_v24  ;;  %v2990_v24 = vld [vmem:[%s3776_s23 + $0xd0] ss:$8 sps:$4 sm:$0xff]  }
  0x3d   : > { %2851 = vmatprep.subr.bf16.mxu0 %v3052_v1 }
  0x40   : > { %2852 = vmatpush3.bf16.msra.mxu0 %v2945_v25  ;;  %v2995_v25 = vld [vmem:[%s3776_s23 + $0xc4] ss:$8 sps:$4 sm:$0xff]  }
  0x41   : > { %1347 = vmatprep.subr.bf16.mxu0 %v2948_v26  ;;  %v2993_v26 = vld [vmem:[%s3776_s23 + $0xc0] ss:$8 sps:$4 sm:$0xff]  }
  0xe3   : > { %v976_v14 = vpop.f32.mrf.mxu0 }
  0xe4   : > { %v977_v15 = vadd.f32 %v2674_v13, %v976_v14  ;;  %v2977_v13 = vld [vmem:[%s3776_s23 + $0x24] ss:$8 sps:$4 sm:$0xff]   ;;  %v2975_v14 = vld [vmem:[%s3776_s23 + $0x20] ss:$8 sps:$4 sm:$0xff]  }
  0xe5   : > { %v2827_v16 = vpop.f32.mrf.mxu0 }
  0xe6   : > { %v982_v17 = vpack.c.bf16 %v977_v15, %v977_v15  ;;  %v2980_v15 = vld [vmem:[%s3776_s23 + $0x14] ss:$8 sps:$4 sm:$0xff]   ;;  %v2978_v16 = vld [vmem:[%s3776_s23 + $0x10] ss:$8 sps:$4 sm:$0xff]  }
  0xe7   : > { %v979_v18 = vpop.f32.mrf.mxu0 }
  0xe8   : > { %v997_v19 = vshll.u32 %v982_v17, 16  ;;  %v995_v21 = vshrl.u32 %v982_v17, 16  ;;  %v2981_v18 = vld [vmem:[%s3776_s23] ss:$8 sps:$4 sm:$0xff]  }
  0xe9   : > { %v2828_v20 = vpop.f32.mrf.mxu0 }
  0xea   : > { %v999_v22 = vrot.slane %v997_v19, 1  ;;  %v2986_v19 = vld [vmem:[%s3776_s23 + $0xf4] ss:$8 sps:$4 sm:$0xff]   ;;  %v2984_v20 = vld [vmem:[%s3776_s23 + $0xf0] ss:$8 sps:$4 sm:$0xff]  }
  0xec   : > { %v1000_v23 = vor.u32 %v999_v22, %v995_v21  ;;  %v2989_v21 = vld [vmem:[%s3776_s23 + $0xe4] ss:$8 sps:$4 sm:$0xff]   ;;  %v2987_v22 = vld [vmem:[%s3776_s23 + $0xe0] ss:$8 sps:$4 sm:$0xff]  }
  0xee   : > { %2834 = vmatmul.mubr.msk.bf16.vlgmr.msra.gmra.mxu1 %vm938_vm1, %v1000_v23  ;;  %v2992_v23 = vld [vmem:[%s3776_s23 + $0xd4] ss:$8 sps:$4 sm:$0xff]  }
  0xef   : > { %2873 = vmatprep.mubr.msk.bf16.mxu1 %vm3053_vm0, %v3052_v1  ;;  %2858 = vmatpush3.bf16.msra.mxu1 %v2952_v28  ;;  %v2998_v28 = vld [vmem:[%s3776_s23 + $0xb4] ss:$8 sps:$4 sm:$0xff]  }
  0xf0   : > { %2859 = vmatprep.subr.bf16.mxu1 %v3052_v1 }
  0xf3   : > { %2860 = vmatpush3.bf16.msra.mxu1 %v2953_v29  ;;  %v2996_v29 = vld [vmem:[%s3776_s23 + $0xb0] ss:$8 sps:$4 sm:$0xff]  }
  0xf4   : > { %2861 = vmatprep.subr.bf16.mxu1 %v3052_v1 }
  0xf7   : > { %2862 = vmatpush3.bf16.msra.mxu1 %v2954_v30  ;;  %v3433_v30 = vsub.s32 0, %v3343_v52 }
  0xf8   : > { %2863 = vmatprep.subr.bf16.mxu1 %v3052_v1 }
  0xfb   : > { %2864 = vmatpush3.bf16.msra.mxu1 %v2955_v31  ;;  %v3001_v31 = vld [vmem:[%s3776_s23 + $0xa4] ss:$8 sps:$4 sm:$0xff]  }
  0xfc   : > { %2865 = vmatprep.subr.bf16.mxu1 %v3052_v1 }
  0xff   : > { %2866 = vmatpush3.bf16.msra.mxu1 %v2956_v32  ;;  %v2999_v32 = vld [vmem:[%s3776_s23 + $0xa0] ss:$8 sps:$4 sm:$0xff]  }
 0x100   : > { %2867 = vmatprep.subr.bf16.mxu1 %v3052_v1 }
 0x103   : > { %2868 = vmatpush3.bf16.msra.mxu1 %v2957_v33  ;;  %v1326_v33 = vrot.slane %v3357_v61, %v3433_v30  ;;  %v1807_v61 = vld [vmem:[%s898_s3 + $0x18] sm:$0xff] }
 0x104   : > { %2869 = vmatprep.subr.bf16.mxu1 %v3052_v1 }
 0x107   : > { %2870 = vmatpush3.bf16.msra.mxu1 %v2958_v34  ;;  %v3004_v34 = vld [vmem:[%s3776_s23 + $0x94] ss:$8 sps:$4 sm:$0xff]  }
 0x108   : > { %2871 = vmatprep.subr.bf16.mxu1 %v3052_v1  ;;  %v2968_v1 = vld [vmem:[%s3776_s23 + $0x54] ss:$8 sps:$4 sm:$0xff]  }
 0x10b   : > { %2872 = vmatpush3.bf16.msra.mxu1 %v2959_v46  ;;  %v3013_v46 = vld [vmem:[%s3778_s25 + $0x28] sm:$0xff]  }
 0x10c   : > { %1584 = vmatprep.subr.bf16.mxu1 %v2962_v47  ;;  %v3014_v47 = vld [vmem:[%s3778_s25 + $0x60] sm:$0xff]  }
 0x1ae   : > { %v1050_v36 = vpop.f32.mrf.mxu1 }
 0x1af   : > { %v1051_v37 = vadd.f32 %v2678_v35, %v1050_v36  ;;  %v3002_v35 = vld [vmem:[%s3776_s23 + $0x90] ss:$8 sps:$4 sm:$0xff]  }
 0x1b0   : > { %v2835_v38 = vpop.f32.mrf.mxu1 }
 0x1b1   : > { %v1056_v39 = vmax.f32 %v1051_v37, 0.0  ;;  %v3007_v37 = vld [vmem:[%s3776_s23 + $0x84] ss:$8 sps:$4 sm:$0xff]   ;;  %v3005_v38 = vld [vmem:[%s3776_s23 + $0x80] ss:$8 sps:$4 sm:$0xff]  }
 0x1b2   : > { %v1053_v40 = vpop.f32.mrf.mxu1 }
 0x1b3   : > { %v1057_v42 = vpack.c.bf16 %v1056_v39, %v1056_v39 }
 0x1b4   : > { %v2836_v44 = vpop.f32.mrf.mxu1 }
 0x1b5   : > { %2854 = vmatmul.mubr.bf16.vlgmr.msra.gmra.mxu0 %v1057_v42  ;;  %v3009_v42 = vld [vmem:[%s3778_s25 + $0x38] sm:$0xff]   ;;  %v3011_v44 = vld [vmem:[%s3778_s25 + $0x30] sm:$0xff]  }
 0x1b6   : > { %1348 = vmatpush1.bf16.msra.mxu0 %v2946_v41  ;;  %1367 = vmatprep.mubr.bf16.mxu0 %v3054_v27  ;;  %v3008_v41 = vld [vmem:[%s3778_s25 + $0x78] sm:$0xff]  }
 0x1b7   : > { %1349 = vmatprep.subr.bf16.mxu0 %v2951_v43  ;;  %v3010_v43 = vld [vmem:[%s3778_s25 + $0x70] sm:$0xff]  }
 0x1ba   : > { %1350 = vmatpush1.bf16.msra.mxu0 %v2949_v45  ;;  %v3012_v45 = vld [vmem:[%s3778_s25 + $0x68] sm:$0xff]  }
 0x1bb   : > { %2791 = vmatprep.subr.bf16.mxu0 %v3008_v41 }
 0x1bd   : > { %2704 = vmatmul.mubr.msk.bf16.vlgmr.msra.gmra.mxu0 %vm938_vm1, %v982_v17  ;;  %v2983_v17 = vld [vmem:[%s3776_s23 + $0x4] ss:$8 sps:$4 sm:$0xff]  }
 0x1be   : > { %2792 = vmatpush3.bf16.msra.mxu0 %v3009_v42  ;;  %v3025_v42 = vld [vmem:[%s3813_s0 + $0x8] sm:$0xff]  }
 0x1bf   : > { %2793 = vmatprep.subr.bf16.mxu0 %v3010_v43 }
 0x1c2   : > { %2794 = vmatpush3.bf16.msra.mxu0 %v3011_v44 }
 0x1c3   : > { %2795 = vmatprep.subr.bf16.mxu0 %v3012_v45  ;;  %v1661_v45 = vld [vmem:[%s3779_s26] sm:$0x1] }
 0x1c6   : > { %2796 = vmatpush3.bf16.msra.mxu0 %v3013_v46 }
 0x1c7   : > { %2797 = vmatprep.subr.bf16.mxu0 %v3014_v47 }
 0x1ca   : > { %2798 = vmatpush3.bf16.msra.mxu0 %v3015_v48 }
 0x275   : > { %v1163_v50 = vpop.f32.mrf.mxu0 }
 0x276   : > { %v1164_v51 = vadd.f32 %v2682_v49, %v1163_v50  ;;  %v3016_v49 = vld [vmem:[%s3778_s25 + $0x58] sm:$0xff]  }
 0x277   : > { %v2855_v53 = vpop.f32.mrf.mxu0  ;;  %v3017_v50 = vld [vmem:[%s3778_s25 + $0x18] sm:$0xff]   ;;  %2799 = vmatprep.subr.bf16.mxu0 %v3016_v49 }
 0x278   : > { %v1169_v54 = vmax.f32 %v1164_v51, 0.0  ;;  %v3018_v51 = vld [vmem:[%s3778_s25 + $0x50] sm:$0xff]   ;;  %2800 = vmatpush3.bf16.msra.mxu0 %v3017_v50 }
 0x279   : > { %v1166_v56 = vpop.f32.mrf.mxu0  ;;  %v3019_v53 = vld [vmem:[%s3778_s25 + $0x10] sm:$0xff]   ;;  %2801 = vmatprep.subr.bf16.mxu0 %v3018_v51 }
 0x27a   : > { %v1170_v58 = vpack.c.bf16 %v1169_v54, %v1169_v54  ;;  %v3020_v54 = vld [vmem:[%s3778_s25 + $0x48] sm:$0xff]  }
 0x27b   : > { %v2856_v60 = vpop.f32.mrf.mxu0  ;;  %v3021_v56 = vld [vmem:[%s3778_s25 + $0x8] sm:$0xff]  }
 0x27c   : > { %2874 = vmatmul.mubr.bf16.vlgmr.msra.gmra.mxu1 %v1170_v58  ;;  %2802 = vmatpush3.bf16.msra.mxu0 %v3019_v53  ;;  %v1803_v58 = vld [vmem:[%s893_s6 + $0x18] sm:$0xff]  ;;  %v3022_v60 = vld [vmem:[%s3778_s25 + $0x40] sm:$0xff]  }
 0x27d   : > { %1585 = vmatpush1.bf16.msra.mxu1 %v2960_v57  ;;  %v3361_v63 = vpop.f32.mrf.mxu0  ;;  %2803 = vmatprep.subr.bf16.mxu0 %v3020_v54  ;;  %v1802_v57 = vld [vmem:[%s893_s6 + $0x10] sm:$0xff] }
 0x27e   : > { %1586 = vmatprep.subr.bf16.mxu1 %v2965_v59  ;;  %v1370_v36 = vadd.f32 %v3361_v63, %v1326_v33  ;;  %v1806_v59 = vld [vmem:[%s898_s3 + $0x10] sm:$0xff]  ;;  %v3023_v63 = vld [vmem:[%s3778_s25] sm:$0xff]  }
 0x27f   : > { %v1371_v2 = vpop.f32.mrf.mxu0 }
 0x280   : > { %v1372_v3 = vadd.f32 %v1371_v2, %v1330_v62  ;;  %v1376_v39 = vmax.f32 %v1370_v36, 0.0  ;;  %2804 = vmatpush3.bf16.msra.mxu0 %v3021_v56  ;;  %v1810_v62 = vadd.f32 %v1806_v59, %v1802_v57  ;;  %v1815_v2 = vld [vmem:[%s903_s15 + $0x18] sm:$0xff] }
 0x281   : > { %1587 = vmatpush1.bf16.msra.mxu1 %v2963_v0  ;;  %v1373_v4 = vpop.f32.mrf.mxu0  ;;  %v1811_v0 = vadd.f32 %v1807_v61, %v1803_v58  ;;  %2805 = vmatprep.subr.bf16.mxu0 %v3022_v60 }
 0x282   : > { %v1377_v6 = vmax.f32 %v1372_v3, 0.0  ;;  %1588 = vmatprep.subr.bf16.mxu1 %v2968_v1  ;;  %v1378_v40 = vpack.c.bf16 %v1376_v39, %v1376_v39  ;;  %v1814_v1 = vld [vmem:[%s903_s15 + $0x10] sm:$0xff] }
 0x283   : > { %v1374_v8 = vpop.f32.mrf.mxu0  ;;  %v1818_v3 = vadd.f32 %v1814_v1, %v1810_v62  ;;  %v1819_v4 = vadd.f32 %v1815_v2, %v1811_v0 }
 0x284   : > { %v1379_v9 = vpack.c.bf16 %v1377_v6, %v1377_v6  ;;  %2806 = vmatpush3.bf16.msra.mxu0 %v3023_v63  ;;  %v1801_v6 = vld [vmem:[%s893_s6 + $0x8] sm:$0xff] }
 0x285   : > { %1589 = vmatpush1.bf16.msra.mxu1 %v2966_v5  ;;  %v1800_v5 = vld [vmem:[%s893_s6] sm:$0xff]  ;;  %v1805_v8 = vld [vmem:[%s898_s3 + $0x8] sm:$0xff]  ;;  %s3817_s6 = sld [smem:[#allocation14_spill]] }
 0x286   : > { %1616 = vmatprep.mubr.bf16.mxu1 %v1379_v9  ;;  %1590 = vmatprep.subr.bf16.mxu1 %v2971_v7  ;;  %v1804_v7 = vld [vmem:[%s898_s3] sm:$0xff]  ;;  %s3055_s3 = smov 64  }
 0x287   : > { %v1808_v9 = vadd.f32 %v1804_v7, %v1800_v5 }
 0x289   : > { %1591 = vmatpush1.bf16.msra.mxu1 %v2969_v10  ;;  %v1825_v10 = vpack.c.bf16 %v1819_v4, %v1818_v3 }
 0x28a   : > { %1592 = vmatprep.subr.bf16.mxu1 %v2974_v11  ;;  %v1809_v11 = vadd.f32 %v1805_v8, %v1801_v6  ;;  %v2691_v6 = vld [vmem:[%s3772_s19] ss:$0 sm:$0xff] }
 0x28b   : > { %2877 = vmatprep.subr.bf16.mxu0 %v1825_v10 }
 0x28d   : > { %1593 = vmatpush1.bf16.msra.mxu1 %v2972_v12  ;;  %v1812_v12 = vld [vmem:[%s903_s15] sm:$0xff] }
 0x28e   : > { %1594 = vmatprep.subr.bf16.mxu1 %v2977_v13  ;;  %v1813_v13 = vld [vmem:[%s903_s15 + $0x8] sm:$0xff]  ;;  %s3814_s15 = sld [smem:[#allocation10_spill]] }
 0x291   : > { %1595 = vmatpush1.bf16.msra.mxu1 %v2975_v14  ;;  %v1816_v14 = vadd.f32 %v1812_v12, %v1808_v9  ;;  %v2052_v9 = vld [vmem:[%s3815_s2] sm:$0xff] }
 0x292   : > { %1596 = vmatprep.subr.bf16.mxu1 %v2980_v15  ;;  %v1817_v15 = vadd.f32 %v1813_v13, %v1809_v11  ;;  %v1282_v11 = vld [vmem:[%s3773_s20] sm:$0xf] }
 0x293   : > { %v2044_v12 = vld [vmem:[%s3816_s5] sm:$0xff] }
 0x294   : > { %v3026_v43 = vld [vmem:[%s3814_s15] sm:$0xff]   ;;  %v3027_v3 = vld [vmem:[%s3814_s15 + $0x8] sm:$0xff]  }
 0x295   : > { %1597 = vmatpush1.bf16.msra.mxu1 %v2978_v16  ;;  %v1824_v16 = vpack.c.bf16 %v1817_v15, %v1816_v14  ;;  %v2078_v14 = vld [vmem:[%s3817_s6] sm:$0xff] }
 0x296   : > { %1598 = vmatprep.subr.bf16.mxu1 %v2983_v17  ;;  %v1828_v17 = vld [vmem:[%s3811_s10 + $0x10] sm:$0xff]  ;;  %v2102_v15 = vld [vmem:[%s3766_s13] sm:$0xff] }
 0x297   : > { %1842 = vperm.xlu0 %2915, %v1828_v17   ;;  %v2103_v17 = vld [vmem:[%s3766_s13 + $0x8] sm:$0xff] }
 0x299   : > { %1599 = vmatpush1.bf16.msra.mxu1 %v2981_v18  ;;  %v1826_v18 = vld [vmem:[%s3811_s10] sm:$0xff] }
 0x29a   : > { %1600 = vmatprep.subr.bf16.mxu1 %v2986_v19  ;;  %1832 = vperm.xlu1 %2916, %v1826_v18   ;;  %v1829_v19 = vld [vmem:[%s3811_s10 + $0x18] sm:$0xff]  ;;  %v3059_v18 = vmov 1  }
 0x29b   : > { %1847 = vperm.xlu0 %2915, %v1829_v19   ;;  %v3060_v19 = vmov 2  }
 0x29d   : > { %1601 = vmatpush2.bf16.msra.mxu1 %v2984_v20  ;;  %v1827_v20 = vld [vmem:[%s3811_s10 + $0x8] sm:$0xff] }
 0x29e   : > { %1602 = vmatprep.subr.bf16.mxu1 %v2989_v21  ;;  %1837 = vperm.xlu1 %2916, %v1827_v20   ;;  %v1997_v21 = vld [vmem:[%s3812_s12] sm:$0xff]  ;;  %v3061_v20 = vmov 4  }
 0x29f   : > { %2000 = vperm.xlu0 %2915, %v1997_v21   ;;  %v3062_v21 = vmov 5  }
 0x2a1   : > { %1603 = vmatpush2.bf16.msra.mxu1 %v2987_v22 }
 0x2a2   : > { %1604 = vmatprep.subr.bf16.mxu1 %v2992_v23 }
 0x2a5   : > { %1605 = vmatpush2.bf16.msra.mxu1 %v2990_v24 }
 0x2a6   : > { %1606 = vmatprep.subr.bf16.mxu1 %v2995_v25 }
 0x2a9   : > { %1607 = vmatpush2.bf16.msra.mxu1 %v2993_v26  ;;  %v1412_v26 = vld [vmem:[%s3777_s24] sm:$0x3] }
 0x2aa   : > { %1608 = vmatprep.subr.bf16.mxu1 %v2998_v28  ;;  %v1577_v28 = vrot.slane %v1412_v26, %v3433_v30 }
 0x2ad   : > { %1609 = vmatpush2.bf16.msra.mxu1 %v2996_v29  ;;  %v1581_v29 = vrot.slane %v1412_v26, %v3346_v55 }
 0x2ae   : > { %1610 = vmatprep.subr.bf16.mxu1 %v3001_v31 }
 0x2b1   : > { %1611 = vmatpush2.bf16.msra.mxu1 %v2999_v32 }
 0x2b2   : > { %1612 = vmatprep.subr.bf16.mxu1 %v3004_v34 }
 0x2b5   : > { %1613 = vmatpush2.bf16.msra.mxu1 %v3002_v35 }
 0x2b6   : > { %1614 = vmatprep.subr.bf16.mxu1 %v3007_v37 }
 0x2b9   : > { %1615 = vmatpush2.bf16.msra.mxu1 %v3005_v38 }
 0x2bc   : > { %1617 = vmatmul.mubr.bf16.vlgmr.msra.gmra.mxu1 %v1378_v40  ;;  %v3024_v40 = vld [vmem:[%s3813_s0] sm:$0xff]  }
 0x312   : > { %v1843_v50 = vpop.permute.xlu0 %1842 }
 0x315   : > { %v1833_v53 = vpop.permute.xlu1 %1832 }
 0x316   : > { %v1848_v57 = vpop.permute.xlu0 %1847 }
 0x319   : > { %v1838_v61 = vpop.permute.xlu1 %1837 }
 0x33c   : > { %v3534_v22 = vpop.f32.mrf.mxu1 }
 0x33e   : > { %v2875_v23 = vpop.f32.mrf.mxu1 }
 0x33f   : > { %v3064_v23 = vmov 7  }
 0x340   : > { %v1279_v24 = vpop.f32.mrf.mxu1 }
 0x341   : > { %v3065_v24 = vmov 6  }
 0x342   : > { %v2876_v25 = vpop.f32.mrf.mxu1 }
 0x343   : > { %v2001_v25 = vpop.permute.xlu0 %2000 }
 0x37c   : > { %v1618_v31 = vpop.f32.mrf.mxu1 }
 0x37d   : > { %v1619_v32 = vadd.f32 %v1618_v31, %v1577_v28 }
 0x37e   : > { %v1620_v33 = vpop.f32.mrf.mxu1 }
 0x37f   : > { %v1621_v34 = vadd.f32 %v1620_v33, %v1581_v29  ;;  %v1625_v35 = vmax.f32 %v1619_v32, 0.0 }
 0x380   : > { %v1622_v36 = vpop.f32.mrf.mxu1 }
 0x381   : > { %v1626_v37 = vmax.f32 %v1621_v34, 0.0  ;;  %v1627_v41 = vpack.c.bf16 %v1625_v35, %v1625_v35 }
 0x382   : > { %v1623_v38 = vpop.f32.mrf.mxu1 }
 0x383   : > { %v1628_v39 = vpack.c.bf16 %v1626_v37, %v1626_v37 }
 0x385   : > { %1790 = vmatprep.mubr.bf16.mxu0 %v1628_v39 }
 0x386   : > { %1791 = vmatmul.mubr.bf16.vlgmr.msra.gmra.mxu0 %v1627_v41 }
 0x387   : > { %2878 = vmatpush3.bf16.msra.mxu0 %v1825_v10  ;;  %2881 = vmatprep.mubr.msk.bf16.mxu0 %vm938_vm1, %v3024_v40  ;;  %v1277_v10 = vadd.f32 %v2691_v6, %v3534_v22  ;;  %v3063_v22 = vmov 3  }
 0x388   : > { %2879 = vmatprep.subr.bf16.mxu0 %v1824_v16 }
 0x389   : > { %v3581_v13 = vmul.f32 %v1282_v11, %v1277_v10 }
 0x38b   : > { %2880 = vmatpush3.bf16.msra.mxu0 %v1824_v16  ;;  %v2079_v16 = vld [vmem:[%s3817_s6 + $0x8] sm:$0xff] }
 0x38e   : > { %2882 = vmatmul.mubr.msk.bf16.vlgmr.msra.gmra.mxu0 %vm938_vm1, %v3025_v42 }
 0x38f   : > { %2889 = vmatprep.mubr.msk.bf16.mxu0 %vm938_vm1, %v3026_v43 }
 0x446   : > { %v2807_v44 = vpop.f32.mrf.mxu0 }
 0x448   : > { %v2808_v46 = vpop.f32.mrf.mxu0 }
 0x449   : > { %v2809_v47 = vadd.f32 %v2808_v46, %v2807_v44 }
 0x44a   : > { %v2810_v48 = vpop.f32.mrf.mxu0 }
 0x44b   : > { %v1793_v49 = vadd.f32 %v2809_v47, %v1661_v45 }
 0x44c   : > { %v2811_v51 = vpop.f32.mrf.mxu0 }
 0x44d   : > { %1799 = vst.msk [vmem:[%s911_s9] sm:$0x1] %vm1798_vm2, %v1793_v49 }
 0x44e   : > { %v2883_v54 = vpop.f32.mrf.mxu0 }
 0x44f   : > { %v1909_v59 = vadd.f32 %v2883_v54, %v1843_v50 }
 0x450   : > { %v1900_v56 = vpop.f32.mrf.mxu0 }
 0x451   : > { %v1901_v63 = vadd.f32 %v1900_v56, %v1833_v53 }
 0x452   : > { %v2884_v58 = vpop.f32.mrf.mxu0 }
 0x453   : > { %v1912_v60 = vadd.f32 %v2884_v58, %v1848_v57 }
 0x454   : > { %v1903_v62 = vpop.f32.mrf.mxu0 }
 0x455   : > { %v1920_v0 = vpack.c.bf16 %v1912_v60, %v1909_v59  ;;  %v1904_v1 = vadd.f32 %v1903_v62, %v1838_v61 }
 0x457   : > { %v1919_v2 = vpack.c.bf16 %v1904_v1, %v1901_v63  ;;  %2885 = vmatprep.subr.bf16.mxu0 %v1920_v0 }
 0x458   : > { %2886 = vmatpush3.bf16.msra.mxu0 %v1920_v0 }
 0x459   : > { %2887 = vmatprep.subr.bf16.mxu0 %v1919_v2 }
 0x45c   : > { %2888 = vmatpush3.bf16.msra.mxu0 %v1919_v2 }
 0x45f   : > { %2890 = vmatmul.mubr.msk.bf16.vlgmr.msra.gmra.mxu0 %vm938_vm1, %v3027_v3 }
 0x51f   : > { %v3564_v4 = vpop.f32.mrf.mxu0 }
 0x521   : > { %v3566_v5 = vpop.f32.mrf.mxu0 }
 0x523   : > { %v2892_v7 = vpop.f32.mrf.mxu0 }
 0x524   : > { %1991 = vrot.lane.b32.xlu0 %v2892_v7, %s3055_s3 }
 0x525   : > { %v1974_v8 = vpop.f32.mrf.mxu0 }
 0x526   : > { %1987 = vrot.lane.b32.xlu1 %v1974_v8, %s3055_s3  ;;  %s3057_s3 = smov 124  }
 0x528   : > { %2055 = vperm.xlu0 %2915, %v2052_v9  }
 0x52a   : > { %2047 = vperm.xlu1 %2916, %v2044_v12  }
 0x52c   : > { %1289 = vrot.lane.b32.xlu0 %v3581_v13, %s3056_s14 }
 0x52e   : > { %1285 = vrot.lane.b32.xlu1 %v3581_v13, %s3057_s3 }
 0x530   : > { %2082 = vperm.xlu0 %2915, %v2078_v14  }
 0x532   : > { %1293 = vrot.lane.b32.xlu1 %v3581_v13, %s3058_s7 }
 0x534   : > { %2106 = vperm.xlu0 %2915, %v2102_v15  }
 0x536   : > { %2087 = vperm.xlu1 %2916, %v2079_v16  }
 0x538   : > { %2917 = vset.pattern.permute.xlu0 %v3059_v18 }
 0x539   : > { %2119 = vperm.xlu0 %2917, %v2078_v14  }
 0x53a   : > { %2111 = vperm.xlu1 %2916, %v2103_v17  }
 0x53d   : > { %2920 = vset.pattern.permute.xlu0 %v3060_v19 }
 0x53e   : > { %2918 = vset.pattern.permute.xlu1 %v3059_v18  ;;  %2147 = vperm.xlu0 %2920, %v2079_v16  }
 0x53f   : > { %2123 = vperm.xlu1 %2918, %v2079_v16  }
 0x542   : > { %2922 = vset.pattern.permute.xlu0 %v3061_v20 }
 0x543   : > { %2919 = vset.pattern.permute.xlu1 %v3060_v19  ;;  %2191 = vperm.xlu0 %2922, %v2078_v14  }
 0x544   : > { %2143 = vperm.xlu1 %2919, %v2078_v14  }
 0x547   : > { %2925 = vset.pattern.permute.xlu0 %v3062_v21 }
 0x548   : > { %2921 = vset.pattern.permute.xlu1 %v3063_v22  ;;  %2219 = vperm.xlu0 %2925, %v2079_v16  }
 0x549   : > { %2167 = vperm.xlu1 %2921, %v2078_v14  }
 0x54c   : > { %2927 = vset.pattern.permute.xlu0 %v3064_v23 }
 0x54d   : > { %2171 = vperm.xlu1 %2921, %v2079_v16   ;;  %2263 = vperm.xlu0 %2927, %v2078_v14  }
 0x551   : > { %2923 = vset.pattern.permute.xlu1 %v3061_v20  ;;  %2930 = vset.pattern.permute.xlu0 %v3059_v18 }
 0x552   : > { %2195 = vperm.xlu1 %2923, %v2079_v16  }
 0x556   : > { %2924 = vset.pattern.permute.xlu1 %v3062_v21 }
 0x557   : > { %2215 = vperm.xlu1 %2924, %v2078_v14  }
 0x55b   : > { %2926 = vset.pattern.permute.xlu1 %v3065_v24 }
 0x55c   : > { %2239 = vperm.xlu1 %2926, %v2078_v14  }
 0x560   : > { %2243 = vperm.xlu1 %2926, %v2079_v16  }
 0x564   : > { %2928 = vset.pattern.permute.xlu1 %v3064_v23 }
 0x565   : > { %2267 = vperm.xlu1 %2928, %v2079_v16  }
 0x569   : > { %2929 = vset.pattern.permute.xlu1 %v3054_v27 }
 0x596   : > { %v1992_v26 = vpop.permute.xlu0 %1991 }
 0x597   : > { %v1996_v28 = vsel %vm1994_vm3, %v3564_v4, %v1992_v26 }
 0x598   : > { %v2004_v29 = vadd.f32 %v2001_v25, %v1996_v28  ;;  %v1988_v31 = vpop.permute.xlu1 %1987 }
 0x599   : > { %v1995_v32 = vsel %vm1994_vm3, %v3566_v5, %v1988_v31 }
 0x59a   : > { %v2011_v33 = vrot.slane %v2004_v29, 4  ;;  %v2003_v34 = vadd.f32 %v2001_v25, %v1995_v32 }
 0x59c   : > { %v2012_v35 = vadd.f32 %v2011_v33, %v2004_v29  ;;  %v2005_v36 = vrot.slane %v2003_v34, 4 }
 0x59e   : > { %v2013_v37 = vrot.slane %v2012_v35, 2  ;;  %v2006_v38 = vadd.f32 %v2005_v36, %v2003_v34 }
 0x5a0   : > { %v2014_v39 = vadd.f32 %v2013_v37, %v2012_v35  ;;  %v2007_v40 = vrot.slane %v2006_v38, 2 }
 0x5a2   : > { %v2008_v41 = vadd.f32 %v2007_v40, %v2006_v38  ;;  %v2015_v42 = vrot.slane %v2014_v39, 1 }
 0x5a3   : > { %v2056_v44 = vpop.permute.xlu0 %2055 }
 0x5a4   : > { %v2009_v27 = vrot.slane %v2008_v41, 1  ;;  %v2016_v43 = vadd.f32 %v2015_v42, %v2014_v39 }
 0x5a5   : > { %v2048_v45 = vpop.permute.xlu1 %2047 }
 0x5a6   : > { %v2010_v46 = vadd.f32 %v2009_v27, %v2008_v41  ;;  %v2019_v47 = vmul.f32 0.125, %v2016_v43 }
 0x5a7   : > { %v1290_v56 = vpop.permute.xlu0 %1289 }
 0x5a8   : > { %v2018_v48 = vmul.f32 0.125, %v2010_v46  ;;  %v2021_v49 = vsub.f32 %v2004_v29, %v2019_v47  ;;  %v3613_v47 = vsub.s32 2, %v3343_v52 }
 0x5a9   : > { %v1286_v50 = vpop.permute.xlu1 %1285 }
 0x5aa   : > { %v2020_v51 = vsub.f32 %v2003_v34, %v2018_v48  ;;  %v2023_v53 = vmul.f32 %v2021_v49, %v2021_v49  ;;  %v1288_v54 = vadd.f32 %v1286_v50, %v3581_v13  ;;  %v3616_v48 = vsub.s32 3, %v3343_v52 }
 0x5ab   : > { %v2083_v38 = vpop.permute.xlu0 %2082 }
 0x5ac   : > { %v2022_v57 = vmul.f32 %v2020_v51, %v2020_v51  ;;  %v2030_v58 = vrot.slane %v2023_v53, 4  ;;  %v1292_v59 = vadd.f32 %v1290_v56, %v1288_v54  ;;  %v3621_v54 = vsub.s32 4, %v3343_v52 }
 0x5ad   : > { %v1294_v60 = vpop.permute.xlu1 %1293  ;;  %v3624_v56 = vsub.s32 5, %v3343_v52 }
 0x5ae   : > { %v2024_v61 = vrot.slane %v2022_v57, 4  ;;  %v2031_v62 = vadd.f32 %v2030_v58, %v2023_v53  ;;  %v1296_v63 = vadd.f32 %v1294_v60, %v1292_v59 }
 0x5af   : > { %v2107_v40 = vpop.permute.xlu0 %2106 }
 0x5b0   : > { %v2025_v0 = vadd.f32 %v2024_v61, %v2022_v57  ;;  %v2032_v1 = vrot.slane %v2031_v62, 2  ;;  %2338 = vperm.xlu0 %2930, %v1296_v63   ;;  %2324 = vperm.xlu1 %2929, %v1296_v63  }
 0x5b1   : > { %v2088_v13 = vpop.permute.xlu1 %2087 }
 0x5b2   : > { %v2026_v2 = vrot.slane %v2025_v0, 2  ;;  %v2033_v3 = vadd.f32 %v2032_v1, %v2031_v62  ;;  %v3637_v62 = vsub.s32 6, %v3343_v52 }
 0x5b4   : > { %v2027_v4 = vadd.f32 %v2026_v2, %v2025_v0  ;;  %v2034_v5 = vrot.slane %v2033_v3, 1  ;;  %2931 = vset.pattern.permute.xlu1 %v3060_v19  ;;  %2933 = vset.pattern.permute.xlu0 %v3063_v22  ;;  %v2120_v42 = vpop.permute.xlu0 %2119 }
 0x5b5   : > { %2354 = vperm.xlu1 %2931, %v1296_v63   ;;  %v3608_v15 = vpop.permute.xlu1 %2111 }
 0x5b6   : > { %v2028_v6 = vrot.slane %v2027_v4, 1  ;;  %v2035_v7 = vadd.f32 %v2034_v5, %v2033_v3 }
 0x5b8   : > { %v2029_v8 = vadd.f32 %v2028_v6, %v2027_v4  ;;  %v2037_v9 = vmul.f32 0.125, %v2035_v7 }
 0x5b9   : > { %2932 = vset.pattern.permute.xlu1 %v3063_v22  ;;  %v2148_v53 = vpop.permute.xlu0 %2147 }
 0x5ba   : > { %v2036_v10 = vmul.f32 0.125, %v2029_v8  ;;  %v2039_v11 = vadd.f32 1e-06, %v2037_v9  ;;  %2370 = vperm.xlu1 %2932, %v1296_v63   ;;  %v2124_v20 = vpop.permute.xlu1 %2123  ;;  %v3640_v63 = vsub.s32 7, %v3343_v52 }
 0x5bc   : > { %v2038_v12 = vadd.f32 1e-06, %v2036_v10  ;;  %3028 = vrsqrt.f32 %v2039_v11 }
 0x5be   : > { %3030 = vrsqrt.f32 %v2038_v12  ;;  %v2192_v12 = vpop.permute.xlu0 %2191 }
 0x5bf   : > { %v2144_v28 = vpop.permute.xlu1 %2143 }
 0x5c4   : > { %v2168_v36 = vpop.permute.xlu1 %2167 }
 0x5c8   : > { %v2172_v39 = vpop.permute.xlu1 %2171 }
 0x5c9   : > { %v3029_v14 = vpop.eup %3028 }
 0x5ca   : > { %v2043_v16 = vmul.f32 %v3029_v14, %v2021_v49 }
 0x5cb   : > { %v3031_v17 = vpop.eup %3030 }
 0x5cc   : > { %v2042_v18 = vmul.f32 %v3031_v17, %v2020_v51  ;;  %v2051_v19 = vmul.f32 %v2048_v45, %v2043_v16 }
 0x5cd   : > { %v3610_v41 = vpop.permute.xlu1 %2195 }
 0x5ce   : > { %v2050_v21 = vmul.f32 %v2048_v45, %v2042_v18  ;;  %v2059_v23 = vadd.f32 %v2056_v44, %v2051_v19 }
 0x5d0   : > { %v2058_v24 = vadd.f32 %v2056_v44, %v2050_v21  ;;  %v2061_v25 = vmul.f32 %v2059_v23, %v2059_v23 }
 0x5d2   : > { %v2060_v22 = vmul.f32 %v2058_v24, %v2058_v24  ;;  %v2063_v26 = vmul.f32 %v2061_v25, %v2059_v23  ;;  %v2216_v49 = vpop.permute.xlu1 %2215 }
 0x5d4   : > { %v2062_v29 = vmul.f32 %v2060_v22, %v2058_v24  ;;  %v2065_v31 = vmul.f32 0.044715, %v2063_v26 }
 0x5d6   : > { %v2064_v32 = vmul.f32 0.044715, %v2062_v29  ;;  %v2067_v33 = vadd.f32 %v2065_v31, %v2059_v23 }
 0x5d7   : > { %v2240_v7 = vpop.permute.xlu1 %2239 }
 0x5d8   : > { %v2066_v34 = vadd.f32 %v2064_v32, %v2058_v24  ;;  %v2069_v35 = vmul.f32 0.7978846, %v2067_v33 }
 0x5da   : > { %v2068_v37 = vmul.f32 0.7978846, %v2066_v34  ;;  %3032 = vtanh.f32 %v2069_v35 }
 0x5dc   : > { %3034 = vtanh.f32 %v2068_v37 }
 0x5e7   : > { %v3033_v27 = vpop.eup %3032 }
 0x5e8   : > { %v2073_v43 = vadd.f32 1.0, %v3033_v27 }
 0x5e9   : > { %v3035_v44 = vpop.eup %3034 }
 0x5ea   : > { %v2072_v45 = vadd.f32 1.0, %v3035_v44  ;;  %v2075_v46 = vmul.f32 0.5, %v2073_v43 }
 0x5ec   : > { %v2074_v50 = vmul.f32 0.5, %v2072_v45  ;;  %v3618_v51 = vmul.f32 %v2075_v46, %v2059_v23 }
 0x5ee   : > { %v3626_v57 = vmul.f32 %v2074_v50, %v2058_v24  ;;  %v2097_v58 = vrot.slane %v3618_v51, %v3433_v30  ;;  %v2133_v59 = vrot.slane %v3618_v51, %v3346_v55  ;;  %v2157_v60 = vrot.slane %v3618_v51, %v3613_v47 }
 0x5ef   : > { %v2181_v61 = vrot.slane %v3618_v51, %v3616_v48  ;;  %v2205_v6 = vrot.slane %v3618_v51, %v3621_v54  ;;  %v2229_v52 = vrot.slane %v3618_v51, %v3624_v56  ;;  %v2253_v18 = vrot.slane %v3618_v51, %v3637_v62 }
 0x5f0   : > { %v2093_v0 = vrot.slane %v3626_v57, %v3433_v30  ;;  %v2099_v1 = vmul.f32 %v2097_v58, %v2083_v38  ;;  %v2101_v2 = vmul.f32 %v2097_v58, %v2088_v13  ;;  %v2129_v3 = vrot.slane %v3626_v57, %v3346_v55 }
 0x5f1   : > { %v2153_v4 = vrot.slane %v3626_v57, %v3613_v47  ;;  %v2177_v5 = vrot.slane %v3626_v57, %v3616_v48  ;;  %v2137_v11 = vmul.f32 %v2133_v59, %v2124_v20  ;;  %v2159_v17 = vmul.f32 %v2157_v60, %v2144_v28 }
 0x5f2   : > { %v2098_v8 = vmul.f32 %v2093_v0, %v2083_v38  ;;  %v2100_v9 = vmul.f32 %v2093_v0, %v2088_v13  ;;  %v2117_v10 = vadd.f32 %v3608_v15, %v2101_v2  ;;  %v2115_v14 = vadd.f32 %v2107_v40, %v2099_v1  ;;  %v2244_v38 = vpop.permute.xlu1 %2243 }
 0x5f3   : > { %v2136_v16 = vmul.f32 %v2129_v3, %v2124_v20  ;;  %v2158_v24 = vmul.f32 %v2153_v4, %v2144_v28  ;;  %v2182_v25 = vmul.f32 %v2177_v5, %v2168_v36  ;;  %v2134_v22 = vmul.f32 %v2129_v3, %v2120_v42 }
 0x5f4   : > { %v2114_v19 = vadd.f32 %v2107_v40, %v2098_v8  ;;  %v2116_v21 = vadd.f32 %v3608_v15, %v2100_v9  ;;  %v2141_v23 = vadd.f32 %v2137_v11, %v2117_v10  ;;  %v2135_v26 = vmul.f32 %v2133_v59, %v2120_v42  ;;  %v2220_v42 = vpop.permute.xlu0 %2219 }
 0x5f5   : > { %v2201_v13 = vrot.slane %v3626_v57, %v3621_v54  ;;  %v2183_v31 = vmul.f32 %v2181_v61, %v2168_v36  ;;  %v2160_v32 = vmul.f32 %v2153_v4, %v2148_v53  ;;  %v2161_v33 = vmul.f32 %v2157_v60, %v2148_v53 }
 0x5f6   : > { %v2140_v29 = vadd.f32 %v2136_v16, %v2116_v21  ;;  %v2184_v20 = vmul.f32 %v2177_v5, %v2172_v39  ;;  %v2138_v34 = vadd.f32 %v2134_v22, %v2114_v19  ;;  %v2139_v35 = vadd.f32 %v2135_v26, %v2115_v14  ;;  %v2268_v9 = vpop.permute.xlu1 %2267 }
 0x5f7   : > { %v2225_v37 = vrot.slane %v3626_v57, %v3624_v56  ;;  %v2185_v15 = vmul.f32 %v2181_v61, %v2172_v39  ;;  %v2209_v28 = vmul.f32 %v2205_v6, %v3610_v41  ;;  %v2165_v27 = vadd.f32 %v2161_v33, %v2141_v23 }
 0x5f8   : > { %v2164_v40 = vadd.f32 %v2160_v32, %v2140_v29  ;;  %v2162_v43 = vadd.f32 %v2158_v24, %v2138_v34  ;;  %v2163_v44 = vadd.f32 %v2159_v17, %v2139_v35  ;;  %v2208_v45 = vmul.f32 %v2201_v13, %v3610_v41  ;;  %v2264_v16 = vpop.permute.xlu0 %2263 }
 0x5f9   : > { %v2231_v36 = vmul.f32 %v2229_v52, %v2216_v49  ;;  %v2189_v50 = vadd.f32 %v2185_v15, %v2165_v27  ;;  %v2206_v53 = vmul.f32 %v2201_v13, %v2192_v12  ;;  %v2249_v58 = vrot.slane %v3626_v57, %v3637_v62 }
 0x5fa   : > { %v2188_v46 = vadd.f32 %v2184_v20, %v2164_v40  ;;  %v2230_v59 = vmul.f32 %v2225_v37, %v2216_v49  ;;  %v2186_v60 = vadd.f32 %v2182_v25, %v2162_v43  ;;  %v2187_v0 = vadd.f32 %v2183_v31, %v2163_v44 }
 0x5fb   : > { %v2207_v39 = vmul.f32 %v2205_v6, %v2192_v12  ;;  %v2213_v1 = vadd.f32 %v2209_v28, %v2189_v50  ;;  %v2232_v2 = vmul.f32 %v2225_v37, %v2220_v42  ;;  %v2233_v3 = vmul.f32 %v2229_v52, %v2220_v42 }
 0x5fc   : > { %v2212_v61 = vadd.f32 %v2208_v45, %v2188_v46  ;;  %v2210_v4 = vadd.f32 %v2206_v53, %v2186_v60  ;;  %v2256_v8 = vmul.f32 %v2249_v58, %v2244_v38  ;;  %v2273_v41 = vrot.slane %v3626_v57, %v3640_v63 }
 0x5fd   : > { %v2211_v5 = vadd.f32 %v2207_v39, %v2187_v0  ;;  %v2237_v11 = vadd.f32 %v2233_v3, %v2213_v1  ;;  %v2257_v14 = vmul.f32 %v2253_v18, %v2244_v38  ;;  %v2277_v49 = vrot.slane %v3618_v51, %v3640_v63 }
 0x5fe   : > { %v2236_v10 = vadd.f32 %v2232_v2, %v2212_v61  ;;  %v2234_v17 = vadd.f32 %v2230_v59, %v2210_v4  ;;  %v2254_v12 = vmul.f32 %v2249_v58, %v2240_v7  ;;  %v2255_v19 = vmul.f32 %v2253_v18, %v2240_v7 }
 0x5ff   : > { %v2235_v6 = vadd.f32 %v2231_v36, %v2211_v5  ;;  %v2261_v52 = vadd.f32 %v2257_v14, %v2237_v11  ;;  %v2280_v23 = vmul.f32 %v2273_v41, %v2268_v9  ;;  %v2281_v24 = vmul.f32 %v2277_v49, %v2268_v9 }
 0x600   : > { %v2260_v21 = vadd.f32 %v2256_v8, %v2236_v10  ;;  %v2258_v25 = vadd.f32 %v2254_v12, %v2234_v17  ;;  %v2278_v26 = vmul.f32 %v2273_v41, %v2264_v16  ;;  %v2279_v57 = vmul.f32 %v2277_v49, %v2264_v16 }
 0x601   : > { %v2259_v22 = vadd.f32 %v2255_v19, %v2235_v6  ;;  %v2285_v29 = vadd.f32 %v2281_v24, %v2261_v52 }
 0x602   : > { %v2284_v13 = vadd.f32 %v2280_v23, %v2260_v21  ;;  %v2282_v31 = vadd.f32 %v2278_v26, %v2258_v25 }
 0x603   : > { %v2283_v32 = vadd.f32 %v2279_v57, %v2259_v22  ;;  %v2289_v20 = vmul.f32 %v2285_v29, %v2285_v29 }
 0x604   : > { %v2288_v33 = vmul.f32 %v2284_v13, %v2284_v13  ;;  %v2286_v34 = vmul.f32 %v2282_v31, %v2282_v31 }
 0x605   : > { %v2287_v51 = vmul.f32 %v2283_v32, %v2283_v32  ;;  %v2293_v37 = vmul.f32 %v2289_v20, %v2285_v29 }
 0x606   : > { %v2292_v35 = vmul.f32 %v2288_v33, %v2284_v13  ;;  %v2290_v38 = vmul.f32 %v2286_v34, %v2282_v31 }
 0x607   : > { %v2291_v7 = vmul.f32 %v2287_v51, %v2283_v32  ;;  %v2297_v15 = vmul.f32 0.044715, %v2293_v37 }
 0x608   : > { %v2296_v18 = vmul.f32 0.044715, %v2292_v35  ;;  %v2294_v28 = vmul.f32 0.044715, %v2290_v38 }
 0x609   : > { %v2295_v40 = vmul.f32 0.044715, %v2291_v7  ;;  %v2301_v42 = vadd.f32 %v2297_v15, %v2285_v29 }
 0x60a   : > { %v2300_v27 = vadd.f32 %v2296_v18, %v2284_v13  ;;  %v2298_v43 = vadd.f32 %v2294_v28, %v2282_v31 }
 0x60b   : > { %v2299_v44 = vadd.f32 %v2295_v40, %v2283_v32  ;;  %v2305_v50 = vmul.f32 0.7978846, %v2301_v42 }
 0x60c   : > { %v2304_v45 = vmul.f32 0.7978846, %v2300_v27  ;;  %v2302_v36 = vmul.f32 0.7978846, %v2298_v43 }
 0x60d   : > { %v2303_v46 = vmul.f32 0.7978846, %v2299_v44 }
 0x60e   : > { %3036 = vtanh.f32 %v2304_v45 }
 0x60f   : > { %3038 = vtanh.f32 %v2302_v36 }
 0x610   : > { %3040 = vtanh.f32 %v2303_v46 }
 0x611   : > { %3042 = vtanh.f32 %v2305_v50 }
 0x61b   : > { %v3037_v53 = vpop.eup %3036 }
 0x61c   : > { %v3039_v58 = vpop.eup %3038  ;;  %v2312_v59 = vadd.f32 1.0, %v3037_v53 }
 0x61d   : > { %v3041_v60 = vpop.eup %3040  ;;  %v2310_v0 = vadd.f32 1.0, %v3039_v58 }
 0x61e   : > { %v3043_v39 = vpop.eup %3042  ;;  %v2311_v61 = vadd.f32 1.0, %v3041_v60  ;;  %v2316_v1 = vmul.f32 0.5, %v2312_v59 }
 0x61f   : > { %v2314_v2 = vmul.f32 0.5, %v2310_v0  ;;  %v2313_v3 = vadd.f32 1.0, %v3043_v39 }
 0x620   : > { %v2315_v4 = vmul.f32 0.5, %v2311_v61  ;;  %v3672_v41 = vmul.f32 %v2316_v1, %v2284_v13 }
 0x621   : > { %v2317_v5 = vmul.f32 0.5, %v2313_v3  ;;  %v3670_v8 = vmul.f32 %v2314_v2, %v2282_v31 }
 0x622   : > { %v3674_v9 = vmul.f32 %v2315_v4, %v2283_v32  ;;  %v2444_v14 = vrot.slane %v3672_v41, %v3346_v55  ;;  %v2490_v16 = vrot.slane %v3672_v41, %v3624_v56  ;;  %v2434_v49 = vrot.slane %v3672_v41, %v3433_v30 }
 0x623   : > { %v3676_v10 = vmul.f32 %v2317_v5, %v2285_v29  ;;  %v2344_v11 = vrot.slane %v3670_v8, %v3346_v55  ;;  %v2398_v6 = vrot.slane %v3670_v8, %v3624_v56  ;;  %v2330_v19 = vrot.slane %v3670_v8, %v3433_v30 }
 0x624   : > { %v2348_v17 = vrot.slane %v3674_v9, %v3346_v55  ;;  %v2402_v12 = vrot.slane %v3674_v9, %v3624_v56  ;;  %v2334_v23 = vrot.slane %v3674_v9, %v3433_v30  ;;  %v2388_v24 = vrot.slane %v3670_v8, %v3621_v54 }
 0x625   : > { %v2448_v21 = vrot.slane %v3676_v10, %v3346_v55  ;;  %v2494_v52 = vrot.slane %v3676_v10, %v3624_v56  ;;  %v2392_v25 = vrot.slane %v3674_v9, %v3621_v54  ;;  %v2438_v22 = vrot.slane %v3676_v10, %v3433_v30 }
 0x626   : > { %v2480_v26 = vrot.slane %v3672_v41, %v3621_v54  ;;  %v2484_v55 = vrot.slane %v3676_v10, %v3621_v54  ;;  %v2360_v56 = vrot.slane %v3670_v8, %v3613_v47  ;;  %v2364_v57 = vrot.slane %v3674_v9, %v3613_v47 }
 0x627   : > { %v2410_v13 = vrot.slane %v3670_v8, %v3637_v62  ;;  %v2414_v29 = vrot.slane %v3674_v9, %v3637_v62  ;;  %v2456_v32 = vrot.slane %v3672_v41, %v3613_v47  ;;  %v2460_v54 = vrot.slane %v3676_v10, %v3613_v47 }
 0x628   : > { %v2502_v33 = vrot.slane %v3672_v41, %v3637_v62  ;;  %v2506_v20 = vrot.slane %v3676_v10, %v3637_v62  ;;  %v2376_v34 = vrot.slane %v3670_v8, %v3616_v48  ;;  %v2380_v51 = vrot.slane %v3674_v9, %v3616_v48 }
 0x629   : > { %v2422_v35 = vrot.slane %v3670_v8, %v3640_v63  ;;  %v2426_v37 = vrot.slane %v3674_v9, %v3640_v63  ;;  %v2468_v47 = vrot.slane %v3672_v41, %v3616_v48  ;;  %v2472_v38 = vrot.slane %v3676_v10, %v3616_v48 }
 0x62a   : > { %v2514_v62 = vrot.slane %v3672_v41, %v3640_v63  ;;  %v2518_v7 = vrot.slane %v3676_v10, %v3640_v63 }
 0x62b   : > { %v2339_v31 = vpop.permute.xlu0 %2338  ;;  %v2325_v30 = vpop.permute.xlu1 %2324 }
 0x62c   : > { %v2349_v18 = vmul.f32 %v2344_v11, %v2339_v31  ;;  %v2350_v15 = vmul.f32 %v2348_v17, %v2339_v31  ;;  %v2403_v28 = vmul.f32 %v2398_v6, %v2339_v31  ;;  %v2404_v40 = vmul.f32 %v2402_v12, %v2339_v31 }
 0x62d   : > { %v2335_v27 = vmul.f32 %v2330_v19, %v2325_v30  ;;  %v2336_v42 = vmul.f32 %v2334_v23, %v2325_v30  ;;  %v2393_v43 = vmul.f32 %v2388_v24, %v2325_v30  ;;  %v2394_v44 = vmul.f32 %v2392_v25, %v2325_v30 }
 0x62e   : > { %v2495_v45 = vmul.f32 %v2490_v16, %v2339_v31  ;;  %v2496_v36 = vmul.f32 %v2494_v52, %v2339_v31  ;;  %v2485_v46 = vmul.f32 %v2480_v26, %v2325_v30  ;;  %v2486_v50 = vmul.f32 %v2484_v55, %v2325_v30 }
 0x62f   : > { %v2449_v48 = vmul.f32 %v2444_v14, %v2339_v31  ;;  %v2450_v58 = vmul.f32 %v2448_v21, %v2339_v31  ;;  %v2439_v0 = vmul.f32 %v2434_v49, %v2325_v30  ;;  %v2440_v39 = vmul.f32 %v2438_v22, %v2325_v30 }
 0x630   : > { %v2355_v53 = vpop.permute.xlu1 %2354  ;;  %v2351_v1 = vadd.f32 %v2349_v18, %v2335_v27  ;;  %v2352_v2 = vadd.f32 %v2350_v15, %v2336_v42  ;;  %v2405_v3 = vadd.f32 %v2403_v28, %v2393_v43  ;;  %v2406_v4 = vadd.f32 %v2404_v40, %v2394_v44 }
 0x631   : > { %v2415_v59 = vmul.f32 %v2410_v13, %v2355_v53  ;;  %v2416_v60 = vmul.f32 %v2414_v29, %v2355_v53  ;;  %v2507_v63 = vmul.f32 %v2502_v33, %v2355_v53  ;;  %v2508_v61 = vmul.f32 %v2506_v20, %v2355_v53 }
 0x632   : > { %v2365_v5 = vmul.f32 %v2360_v56, %v2355_v53  ;;  %v2366_v8 = vmul.f32 %v2364_v57, %v2355_v53  ;;  %v2497_v41 = vadd.f32 %v2495_v45, %v2485_v46  ;;  %v2498_v9 = vadd.f32 %v2496_v36, %v2486_v50 }
 0x633   : > { %v2461_v10 = vmul.f32 %v2456_v32, %v2355_v53  ;;  %v2462_v11 = vmul.f32 %v2460_v54, %v2355_v53  ;;  %v2417_v16 = vadd.f32 %v2415_v59, %v2405_v3  ;;  %v2418_v14 = vadd.f32 %v2416_v60, %v2406_v4 }
 0x634   : > { %v2451_v6 = vadd.f32 %v2449_v48, %v2439_v0  ;;  %v2452_v12 = vadd.f32 %v2450_v58, %v2440_v39  ;;  %v2509_v49 = vadd.f32 %v2507_v63, %v2497_v41  ;;  %v2510_v19 = vadd.f32 %v2508_v61, %v2498_v9 }
 0x635   : > { %v2371_v17 = vpop.permute.xlu1 %2370  ;;  %v2367_v56 = vadd.f32 %v2365_v5, %v2351_v1  ;;  %v2368_v57 = vadd.f32 %v2366_v8, %v2352_v2 }
 0x636   : > { %v2381_v21 = vmul.f32 %v2376_v34, %v2371_v17  ;;  %v2382_v52 = vmul.f32 %v2380_v51, %v2371_v17  ;;  %v2427_v23 = vmul.f32 %v2422_v35, %v2371_v17  ;;  %v2428_v24 = vmul.f32 %v2426_v37, %v2371_v17 }
 0x637   : > { %v2473_v25 = vmul.f32 %v2468_v47, %v2371_v17  ;;  %v2474_v22 = vmul.f32 %v2472_v38, %v2371_v17  ;;  %v2519_v26 = vmul.f32 %v2514_v62, %v2371_v17  ;;  %v2520_v55 = vmul.f32 %v2518_v7, %v2371_v17 }
 0x638   : > { %v2429_v13 = vadd.f32 %v2427_v23, %v2417_v16  ;;  %v2430_v29 = vadd.f32 %v2428_v24, %v2418_v14  ;;  %v2463_v31 = vadd.f32 %v2461_v10, %v2451_v6  ;;  %v2464_v30 = vadd.f32 %v2462_v11, %v2452_v12 }
 0x639   : > { %v2521_v32 = vadd.f32 %v2519_v26, %v2509_v49  ;;  %v2522_v54 = vadd.f32 %v2520_v55, %v2510_v19  ;;  %v2383_v33 = vadd.f32 %v2381_v21, %v2367_v56  ;;  %v2384_v20 = vadd.f32 %v2382_v52, %v2368_v57 }
 0x63a   : > { %v2525_v34 = vrot.slane %v2429_v13, 4  ;;  %v2526_v51 = vrot.slane %v2430_v29, 4  ;;  %v2475_v35 = vadd.f32 %v2473_v25, %v2463_v31  ;;  %v2476_v37 = vadd.f32 %v2474_v22, %v2464_v30 }
 0x63b   : > { %v2531_v47 = vrot.slane %v2521_v32, 4  ;;  %v2532_v38 = vrot.slane %v2522_v54, 4 }
 0x63c   : > { %v2536_v62 = vsel %vm2535_vm4, %v2383_v33, %v2525_v34  ;;  %v2537_v7 = vsel %vm2535_vm4, %v2384_v20, %v2526_v51 }
 0x63d   : > { %v2538_v18 = vsel %vm2535_vm4, %v2475_v35, %v2531_v47  ;;  %v2539_v15 = vsel %vm2535_vm4, %v2476_v37, %v2532_v38  ;;  %2540 = vst [vmem:[%s908_s11] sm:$0xff] %v2536_v62  ;;  %2541 = vst [vmem:[%s908_s11 + $0x8] sm:$0xff] %v2537_v7 }
 0x63e   : > { %2542 = vst [vmem:[%s908_s11 + $0x10] sm:$0xff] %v2538_v18  ;;  %2543 = vst [vmem:[%s908_s11 + $0x18] sm:$0xff] %v2539_v15 }
 0x63f PF: > { %s39_s8 = sadd.s32 1, %s3050_s8  }
 0x640   : > { %p36_p4 = scmp.ge.s32.totalorder %s39_s8, 4  }
 0x642   :  { %38 = sbr.rel (!%p36_p4) target bundleno = 16 (0x10), region = 179 }

</bundles_post_ra>
